<compile_context>
chip_gen: v7x
topology: tpu7x:2x2x1
jax: 0.10.0
libtpu: 0.0.40
codegen_flags: <defaults>
</compile_context>

<pallas_src>
import functools

import jax
import jax.numpy as jnp
from jax.experimental import pallas as pl
from jax.experimental.pallas import tpu as pltpu

_DEAD = -(2 ** 30)  # padded-edge index: never matches any gather/scatter column


def _round_up(x, m):
    return ((x + m - 1) // m) * m


def _sigmoid(x):
    # 1/(1+exp(-x)): reciprocal seeded on the EUP (approx vrcp) and refined
    # with one Newton step -> ~f32 accuracy without a VALU divide.
    d = 1.0 + jnp.exp(-jnp.maximum(x, -60.0))      # clamp: no inf intermediate
    r = pl.reciprocal(d, approx=True)
    return r * (2.0 - d * r)


def _mp_kernel(bm_ref,                                   # scalar-prefetch: block -> receiver tile
               ea_ref, isnd_ref, irec_c_ref, irec_r_ref,  # edge stream
               w1su_ref, p_rec_ref, w2_ref, b2_ref,       # params / projections
               out_ref):
    b = pl.program_id(0)
    rt = bm_ref[b]                                   # receiver tile of this block
    prev_rt = bm_ref[jnp.maximum(b - 1, 0)]

    # Zero the (revisited) output block on the first edge block of its tile.
    @pl.when(jnp.logical_or(b == 0, rt != prev_rt))
    def _():
        out_ref[...] = jnp.zeros_like(out_ref)

    te, k_su = ea_ref.shape            # k_su = N_send + num_inv
    tn = out_ref.shape[0]              # rec_tile
    bf16 = jnp.bfloat16

    # --- fused send-gather + edge_attr LHS (bf16, exact one-hot) -----------
    # ea_ref already holds edge_attr pre-placed in columns [Ns, Ns+I); the
    # one-hot only populates columns [0, Ns), so a plain add fuses them.
    su_cols = jax.lax.broadcasted_iota(jnp.int32, (te, k_su), 1)
    lhs_su = (isnd_ref[...] == su_cols).astype(bf16) + ea_ref[...]   # [TE, Ns+I]

    # --- receiver gather one-hot restricted to this tile's rec_tile columns -
    rec_base = rt * tn
    rec_cols = rec_base + jax.lax.broadcasted_iota(jnp.int32, (te, tn), 1)
    g_rec = (irec_c_ref[...] == rec_cols).astype(bf16)               # [TE, TN]

    # Message MLP pre-activation (b1 folded into P_rec in the wrapper); all
    # padded lanes (>= H) are exactly zero by construction. f32 accumulation.
    h = (jnp.dot(lhs_su, w1su_ref[...], preferred_element_type=jnp.float32)
         + jnp.dot(g_rec, p_rec_ref[...], preferred_element_type=jnp.float32))

    msg = h * _sigmoid(h)                                            # SiLU

    # Edge-inference MLP: Linear(H -> 1) + Sigmoid (w2 padded lanes are 0).
    logit = jnp.sum(msg * w2_ref[...], axis=-1, keepdims=True) + b2_ref[0]
    weighted = (msg * _sigmoid(logit)).astype(bf16)                  # [TE, Hp]

    # --- scatter-add into this tile's output rows (bf16 MXU, f32 accum) ----
    row_ids = rec_base + jax.lax.broadcasted_iota(jnp.int32, (tn, te), 0)
    scatter = (irec_r_ref[...] == row_ids).astype(bf16)              # [TN, TE]
    out_ref[...] += jax.lax.dot_general(
        scatter, weighted,
        dimension_numbers=(((1,), (0,)), ((), ())),
        preferred_element_type=jnp.float32)


@functools.partial(jax.jit, static_argnames=("edge_tile", "rec_tile"))
def base_message_passing_layer(x_send, x_rec, index_send, index_rec, edge_attr,
                               w1, b1, w2, b2, *, edge_tile=1024, rec_tile=None):
    """Pallas TPU implementation of BaseMessagePassingLayer.forward.

    x_send: [N_send, H]   x_rec: [N_rec, H]
    index_send, index_rec: [E] int
    edge_attr: [E, I]
    w1: [2H+I, H]  (transposed PyTorch Linear weight)   b1: [H]
    w2: [1, H]     (PyTorch Linear(H, 1) weight)        b2: [1]
    returns: [N_rec, H]
    """
    assert edge_tile % 128 == 0, "edge_tile must be a multiple of 128 lanes"
    n_send, h = x_send.shape
    n_rec, h2 = x_rec.shape
    assert h == h2
    e_total, n_inv = edge_attr.shape

    if rec_tile is None:
        rec_tile = min(256, _round_up(n_rec, 8))
    assert rec_tile % 8 == 0, "rec_tile must be a multiple of 8 sublanes"

    f32 = jnp.float32
    bf16 = jnp.bfloat16
    x_send_f = x_send.astype(f32)
    x_rec_f = x_rec.astype(f32)
    w1 = w1.astype(f32); b1 = b1.astype(f32)
    w2 = w2.astype(f32); b2 = b2.astype(f32)

    # ---- lane-dense hidden dim (pad H up to a multiple of 128) ------------
    h_pad = _round_up(h, 128)
    pad_h = h_pad - h
    w1a, w1b, w1c = w1[:h], w1[h:2 * h], w1[2 * h:]

    # ---- hoisted node projections: O(N*H^2), stacked constant RHS ---------
    p_send = jnp.pad(x_send_f @ w1a, ((0, 0), (0, pad_h)))           # [Ns, Hp]
    w1c_p = jnp.pad(w1c, ((0, 0), (0, pad_h)))                       # [I,  Hp]
    w1su = jnp.concatenate([p_send, w1c_p], axis=0).astype(bf16)     # [Ns+I, Hp]
    k_su = n_send + n_inv

    n_rec_p = _round_up(n_rec, rec_tile)
    nrt = n_rec_p // rec_tile
    p_rec = jnp.pad(x_rec_f @ w1b + b1[None, :],
                    ((0, n_rec_p - n_rec), (0, pad_h))).astype(bf16)  # [Nrp, Hp]

    w2_p = jnp.pad(w2.reshape(1, h), ((0, 0), (0, pad_h)))            # [1, Hp] f32
    b2_s = b2.reshape(1)

    # ---- sort edges by receiver and bucket into receiver tiles ------------
    te = edge_tile
    isnd = index_send.astype(jnp.int32)
    irec = index_rec.astype(jnp.int32)
    order = jnp.argsort(irec)
    isnd_s = isnd[order]
    irec_s = irec[order]
    ea_s = edge_attr.astype(bf16)[order]

    # Out-of-range receivers are clipped into a tile; they never match a
    # gather/scatter column there, so (like the old version) they are dropped.
    tile_of_edge = jnp.clip(irec_s // rec_tile, 0, nrt - 1)
    counts = jax.ops.segment_sum(jnp.ones((e_total,), jnp.int32), tile_of_edge,
                                 num_segments=nrt, indices_are_sorted=True)
    block_counts = (jnp.maximum(counts, 1) + te - 1) // te   # >=1 block per tile
    block_ends = jnp.cumsum(block_counts)                    # inclusive
    tile_block_off = block_ends - block_counts               # exclusive
    tile_edge_off = tile_block_off * te
    edge_starts = jnp.cumsum(counts) - counts
    dest = tile_edge_off[tile_of_edge] + (
        jnp.arange(e_total, dtype=jnp.int32) - edge_starts[tile_of_edge])

    # Static upper bound on the padded edge count (sum(padded) <= E + nrt*te).
    e_stat = _round_up(max(e_total, 1), te) + nrt * te
    n_blocks = e_stat // te

    # edge_attr pre-placed into columns [Ns, Ns+I) -> fused gather matmul.
    ea_wide = jnp.pad(ea_s, ((0, 0), (n_send, 0)))
    ea_p = jnp.zeros((e_stat, k_su), bf16).at[dest].set(ea_wide)
    isnd_p = jnp.full((e_stat,), _DEAD, jnp.int32).at[dest].set(isnd_s)
    irec_p = jnp.full((e_stat,), _DEAD, jnp.int32).at[dest].set(irec_s)

    # block -> receiver tile (trailing fully-padded blocks map to the last
    # tile: contiguous, all-dead, contribute exactly zero).
    block_map = jnp.minimum(
        jnp.searchsorted(block_ends, jnp.arange(n_blocks, dtype=jnp.int32),
                         side="right"),
        nrt - 1).astype(jnp.int32)

    isnd_col = isnd_p.reshape(e_stat, 1)    # gather one-hots   [TE, cols]
    irec_col = irec_p.reshape(e_stat, 1)
    irec_row = irec_p.reshape(1, e_stat)    # scatter one-hot   [TN, TE]

    # ---- cost estimate (lets XLA schedule the hoisted matmuls around us) --
    ce = pl.CostEstimate(
        flops=int(2 * e_stat * k_su * h_pad
                  + 4 * e_stat * rec_tile * h_pad     # rec gather + scatter
                  + 12 * e_stat * h_pad),             # elementwise chain
        transcendentals=int(e_stat * (h_pad + 1)),
        bytes_accessed=int(e_stat * (2 * k_su + 12)
                           + n_blocks * (2 * k_su * h_pad + 2 * rec_tile * h_pad
                                         + 4 * h_pad)
                           + 2 * n_rec_p * h_pad * 4))

    edge_map = lambda b, bm: (b, 0)
    row_map = lambda b, bm: (0, b)
    const_map = lambda b, bm: (0, 0)
    rec_map = lambda b, bm: (bm[b], 0)      # data-dependent (scalar prefetch)

    out = pl.pallas_call(
        _mp_kernel,
        out_shape=jax.ShapeDtypeStruct((n_rec_p, h_pad), f32),
        grid_spec=pltpu.PrefetchScalarGridSpec(
            num_scalar_prefetch=1,
            grid=(n_blocks,),
            in_specs=[
                pl.BlockSpec((te, k_su), edge_map),                  # ea (wide)
                pl.BlockSpec((te, 1), edge_map),                     # idx_send
                pl.BlockSpec((te, 1), edge_map),                     # idx_rec (col)
                pl.BlockSpec((1, te), row_map),                      # idx_rec (row)
                pl.BlockSpec((k_su, h_pad), const_map),              # [P_send; W1c]
                pl.BlockSpec((rec_tile, h_pad), rec_map),            # P_rec tile
                pl.BlockSpec((1, h_pad), const_map),                 # W2
                pl.BlockSpec(memory_space=pltpu.MemorySpace.SMEM),   # b2 scalar
            ],
            # Output block revisited across each receiver tile's contiguous
            # run of edge blocks -> VMEM-resident accumulator.
            out_specs=pl.BlockSpec((rec_tile, h_pad), rec_map),
        ),
        compiler_params=pltpu.CompilerParams(
            dimension_semantics=("arbitrary",),
            vmem_limit_bytes=48 * 1024 * 1024),       # headroom vs v7x 64 MiB
        cost_estimate=ce,
    )(block_map, ea_p, isnd_col, irec_col, irec_row, w1su, p_rec, w2_p, b2_s)

    return out[:n_rec, :h].astype(x_rec.dtype)


def _reference(x_send, x_rec, index_send, index_rec, edge_attr, w1, b1, w2, b2):
    sim_send = x_send[index_send]
    sim_rec = x_rec[index_rec]
    state = jnp.concatenate([sim_send, sim_rec, edge_attr], axis=1)
    h = state @ w1 + b1
    msg = jax.nn.silu(h)
    ew = jax.nn.sigmoid(jnp.sum(msg * w2, axis=-1, keepdims=True) + b2)
    return jax.ops.segment_sum(msg * ew, index_rec, num_segments=x_rec.shape[0])


if __name__ == "__main__":
    # Small, deterministic problem. Tile sizes chosen so the demo exercises
    # multiple receiver tiles, multiple edge blocks per tile, per-tile edge
    # padding and the trailing dead blocks.
    num_hidden = 32    # H
    num_inv = 8        # I
    n_send = 16
    n_rec = 16
    n_edges = 1000

    key = jax.random.PRNGKey(0)
    k = jax.random.split(key, 9)

    x_send = jax.random.normal(k[0], (n_send, num_hidden), dtype=jnp.float32)
    x_rec = jax.random.normal(k[1], (n_rec, num_hidden), dtype=jnp.float32)
    index_send = jax.random.randint(k[2], (n_edges,), 0, n_send, dtype=jnp.int32)
    index_rec = jax.random.randint(k[3], (n_edges,), 0, n_rec, dtype=jnp.int32)
    edge_attr = jax.random.normal(k[4], (n_edges, num_inv), dtype=jnp.float32)

    # Deterministic parameter init (shapes from nn.Linear in __init__).
    fan1 = 2 * num_hidden + num_inv
    lim1 = 1.0 / jnp.sqrt(fan1)
    w1 = jax.random.uniform(k[5], (fan1, num_hidden), jnp.float32, -lim1, lim1)
    b1 = jax.random.uniform(k[6], (num_hidden,), jnp.float32, -lim1, lim1)
    lim2 = 1.0 / jnp.sqrt(num_hidden)
    w2 = jax.random.uniform(k[7], (1, num_hidden), jnp.float32, -lim2, lim2)
    b2 = jax.random.uniform(k[8], (1,), jnp.float32, -lim2, lim2)

    out = base_message_passing_layer(
        x_send, x_rec, index_send, index_rec, edge_attr, w1, b1, w2, b2,
        edge_tile=256, rec_tile=8)
    out = jax.block_until_ready(out)

    ref = _reference(x_send, x_rec, index_send, index_rec, edge_attr,
                     w1, b1, w2, b2)
    assert out.shape == (n_rec, num_hidden)
    # Tolerance covers bf16 MXU operands (exact 0/1 one-hots, bf16 projections
    # and messages, f32 accumulation), the approx-reciprocal sigmoid and the
    # reassociation of the split/hoisted W1 matmul vs the fused reference.
    max_err = float(jnp.max(jnp.abs(out - ref)))
    assert jnp.allclose(out, ref, atol=3e-2, rtol=2e-2), f"mismatch: {max_err}"

    print("KERNEL_OK")
</pallas_src>

<mosaic_0001>
module attributes {stable_mosaic.version = 11 : i64} {
  func.func @_mp_kernel(%arg0: i32, %arg1: memref<6xi32, #tpu.memory_space<smem>>, %arg2: memref<256x24xbf16, #tpu.memory_space<vmem>>, %arg3: memref<256x1xi32, #tpu.memory_space<vmem>>, %arg4: memref<256x1xi32, #tpu.memory_space<vmem>>, %arg5: memref<1x256xi32, #tpu.memory_space<vmem>>, %arg6: memref<24x128xbf16, #tpu.memory_space<vmem>>, %arg7: memref<8x128xbf16, #tpu.memory_space<vmem>>, %arg8: memref<1x128xf32, #tpu.memory_space<vmem>>, %arg9: memref<1xf32, #tpu.memory_space<smem>>, %arg10: memref<8x128xf32, #tpu.memory_space<vmem>>) attributes {dimension_semantics = [#tpu.dimension_semantics<arbitrary>], iteration_bounds = array<i64: 6>, scalar_prefetch = 1 : i64, scratch_operands = 0 : i64, tpu.core_type = #tpu.core_type<tc>, window_params = [{transform_indices = @transform_0, window_bounds = array<i64: 256, 24>}, {transform_indices = @transform_1, window_bounds = array<i64: 256, 1>}, {transform_indices = @transform_2, window_bounds = array<i64: 256, 1>}, {transform_indices = @transform_3, window_bounds = array<i64: 1, 256>}, {pipeline_mode = #tpu.pipeline_mode<synchronous>, transform_indices = @transform_4, window_bounds = array<i64: 24, 128>}, {transform_indices = @transform_5, window_bounds = array<i64: 8, 128>}, {pipeline_mode = #tpu.pipeline_mode<synchronous>, transform_indices = @transform_6, window_bounds = array<i64: 1, 128>}, {transform_indices = @transform_7, window_bounds = array<i64: 1>}, {transform_indices = @transform_8, window_bounds = array<i64: 8, 128>}]} {
    %0 = arith.index_cast %arg0 : i32 to index
    %1 = memref.load %arg1[%0] : memref<6xi32, #tpu.memory_space<smem>>
    %c1_i32 = arith.constant 1 : i32
    %2 = arith.subi %arg0, %c1_i32 : i32
    %c0_i32 = arith.constant 0 : i32
    %3 = arith.maxsi %2, %c0_i32 : i32
    %4 = arith.index_cast %3 : i32 to index
    %5 = memref.load %arg1[%4] : memref<6xi32, #tpu.memory_space<smem>>
    %c0_i32_0 = arith.constant 0 : i32
    %6 = arith.cmpi eq, %arg0, %c0_i32_0 : i32
    %7 = arith.cmpi ne, %1, %5 : i32
    %8 = arith.ori %6, %7 : i1
    %9 = arith.extui %8 : i1 to i32
    %c0_i32_1 = arith.constant 0 : i32
    %10 = arith.cmpi ne, %9, %c0_i32_1 : i32
    scf.if %10 {
      %cst_31 = arith.constant 0.000000e+00 : f32
      %84 = vector.broadcast %cst_31 : f32 to vector<8x128xf32>
      %c0_32 = arith.constant 0 : index
      %c0_33 = arith.constant 0 : index
      %85 = vector.load %arg10[%c0_32, %c0_33] : memref<8x128xf32, #tpu.memory_space<vmem>>, vector<8x128xf32>
      tpu.vector_store %arg10[%c0_32, %c0_33], %84 {strides = array<i32>} : memref<8x128xf32, #tpu.memory_space<vmem>>, vector<8x128xf32>,
    } else {
    }
    %11 = tpu.iota {dimensions = array<i32: 1>} : vector<256x24xi32>
    %c0 = arith.constant 0 : index
    %c0_2 = arith.constant 0 : index
    %12 = vector.load %arg3[%c0, %c0_2] : memref<256x1xi32, #tpu.memory_space<vmem>>, vector<256x1xi32>
    %13 = vector.broadcast %12 : vector<256x1xi32> to vector<256x24xi32>
    %14 = arith.cmpi eq, %13, %11 : vector<256x24xi32>
    %15 = arith.extui %14 : vector<256x24xi1> to vector<256x24xi32>
    %16 = arith.sitofp %15 : vector<256x24xi32> to vector<256x24xf32>
    %17 = arith.truncf %16 : vector<256x24xf32> to vector<256x24xbf16>
    %c0_3 = arith.constant 0 : index
    %c0_4 = arith.constant 0 : index
    %18 = vector.load %arg2[%c0_3, %c0_4] : memref<256x24xbf16, #tpu.memory_space<vmem>>, vector<256x24xbf16>
    %19 = arith.addf %17, %18 : vector<256x24xbf16>
    %c8_i32 = arith.constant 8 : i32
    %20 = arith.muli %1, %c8_i32 : i32
    %21 = tpu.iota {dimensions = array<i32: 1>} : vector<256x8xi32>
    %22 = vector.broadcast %20 : i32 to vector<256x8xi32>
    %23 = arith.addi %22, %21 : vector<256x8xi32>
    %c0_5 = arith.constant 0 : index
    %c0_6 = arith.constant 0 : index
    %24 = vector.load %arg4[%c0_5, %c0_6] : memref<256x1xi32, #tpu.memory_space<vmem>>, vector<256x1xi32>
    %25 = vector.broadcast %24 : vector<256x1xi32> to vector<256x8xi32>
    %26 = arith.cmpi eq, %25, %23 : vector<256x8xi32>
    %27 = arith.extui %26 : vector<256x8xi1> to vector<256x8xi32>
    %28 = arith.sitofp %27 : vector<256x8xi32> to vector<256x8xf32>
    %29 = arith.truncf %28 : vector<256x8xf32> to vector<256x8xbf16>
    %c0_7 = arith.constant 0 : index
    %c0_8 = arith.constant 0 : index
    %30 = vector.load %arg6[%c0_7, %c0_8] : memref<24x128xbf16, #tpu.memory_space<vmem>>, vector<24x128xbf16>
    %cst = arith.constant dense<0.000000e+00> : vector<256x128xf32>
    %31 = tpu.matmul %19, %30, %cst {dimension_numbers = #tpu.dot_dimension_numbers<[1], [0], [0], [1], [0, 0, 1, 1], [], []>} : vector<256x24xbf16>, vector<24x128xbf16>, vector<256x128xf32> -> vector<256x128xf32>
    %c0_9 = arith.constant 0 : index
    %c0_10 = arith.constant 0 : index
    %32 = vector.load %arg7[%c0_9, %c0_10] : memref<8x128xbf16, #tpu.memory_space<vmem>>, vector<8x128xbf16>
    %cst_11 = arith.constant dense<0.000000e+00> : vector<256x128xf32>
    %33 = tpu.matmul %29, %32, %cst_11 {dimension_numbers = #tpu.dot_dimension_numbers<[1], [0], [0], [1], [0, 0, 1, 1], [], []>} : vector<256x8xbf16>, vector<8x128xbf16>, vector<256x128xf32> -> vector<256x128xf32>
    %34 = arith.addf %31, %33 : vector<256x128xf32>
    %cst_12 = arith.constant -6.000000e+01 : f32
    %35 = vector.broadcast %cst_12 : f32 to vector<256x128xf32>
    %36 = arith.maximumf %34, %35 : vector<256x128xf32>
    %cst_13 = arith.constant 0.000000e+00 : f32
    %37 = vector.broadcast %cst_13 : f32 to vector<256x128xf32>
    %38 = arith.subf %37, %36 : vector<256x128xf32>
    %39 = math.exp %38 : vector<256x128xf32>
    %cst_14 = arith.constant 1.000000e+00 : f32
    %40 = vector.broadcast %cst_14 : f32 to vector<256x128xf32>
    %41 = arith.addf %40, %39 : vector<256x128xf32>
    %42 = tpu.reciprocal %41 {approx = true} : vector<256x128xf32> -> vector<256x128xf32>
    %43 = arith.mulf %41, %42 : vector<256x128xf32>
    %cst_15 = arith.constant 2.000000e+00 : f32
    %44 = vector.broadcast %cst_15 : f32 to vector<256x128xf32>
    %45 = arith.subf %44, %43 : vector<256x128xf32>
    %46 = arith.mulf %42, %45 : vector<256x128xf32>
    %47 = arith.mulf %34, %46 : vector<256x128xf32>
    %c0_16 = arith.constant 0 : index
    %c0_17 = arith.constant 0 : index
    %48 = vector.load %arg8[%c0_16, %c0_17] : memref<1x128xf32, #tpu.memory_space<vmem>>, vector<1x128xf32>
    %49 = vector.broadcast %48 : vector<1x128xf32> to vector<256x128xf32>
    %50 = arith.mulf %47, %49 : vector<256x128xf32>
    %cst_18 = arith.constant dense<0.000000e+00> : vector<256xf32>
    %51 = vector.multi_reduction <add>, %50, %cst_18 [1] : vector<256x128xf32> to vector<256xf32>
    %52 = vector.shape_cast %51 : vector<256xf32> to vector<256x1xf32>
    %c0_19 = arith.constant 0 : index
    %53 = memref.load %arg9[%c0_19] : memref<1xf32, #tpu.memory_space<smem>>
    %54 = vector.broadcast %53 : f32 to vector<256x1xf32>
    %55 = arith.addf %52, %54 : vector<256x1xf32>
    %cst_20 = arith.constant -6.000000e+01 : f32
    %56 = vector.broadcast %cst_20 : f32 to vector<256x1xf32>
    %57 = arith.maximumf %55, %56 : vector<256x1xf32>
    %cst_21 = arith.constant 0.000000e+00 : f32
    %58 = vector.broadcast %cst_21 : f32 to vector<256x1xf32>
    %59 = arith.subf %58, %57 : vector<256x1xf32>
    %60 = math.exp %59 : vector<256x1xf32>
    %cst_22 = arith.constant 1.000000e+00 : f32
    %61 = vector.broadcast %cst_22 : f32 to vector<256x1xf32>
    %62 = arith.addf %61, %60 : vector<256x1xf32>
    %63 = tpu.reciprocal %62 {approx = true} : vector<256x1xf32> -> vector<256x1xf32>
    %64 = arith.mulf %62, %63 : vector<256x1xf32>
    %cst_23 = arith.constant 2.000000e+00 : f32
    %65 = vector.broadcast %cst_23 : f32 to vector<256x1xf32>
    %66 = arith.subf %65, %64 : vector<256x1xf32>
    %67 = arith.mulf %63, %66 : vector<256x1xf32>
    %68 = vector.broadcast %67 : vector<256x1xf32> to vector<256x128xf32>
    %69 = arith.mulf %47, %68 : vector<256x128xf32>
    %70 = arith.truncf %69 : vector<256x128xf32> to vector<256x128xbf16>
    %71 = tpu.iota {dimensions = array<i32: 0>} : vector<8x256xi32>
    %72 = vector.broadcast %20 : i32 to vector<8x256xi32>
    %73 = arith.addi %72, %71 : vector<8x256xi32>
    %c0_24 = arith.constant 0 : index
    %c0_25 = arith.constant 0 : index
    %74 = vector.load %arg5[%c0_24, %c0_25] : memref<1x256xi32, #tpu.memory_space<vmem>>, vector<1x256xi32>
    %75 = vector.broadcast %74 : vector<1x256xi32> to vector<8x256xi32>
    %76 = arith.cmpi eq, %75, %73 : vector<8x256xi32>
    %77 = arith.extui %76 : vector<8x256xi1> to vector<8x256xi32>
    %78 = arith.sitofp %77 : vector<8x256xi32> to vector<8x256xf32>
    %79 = arith.truncf %78 : vector<8x256xf32> to vector<8x256xbf16>
    %c0_26 = arith.constant 0 : index
    %c0_27 = arith.constant 0 : index
    %80 = vector.load %arg10[%c0_26, %c0_27] : memref<8x128xf32, #tpu.memory_space<vmem>>, vector<8x128xf32>
    %cst_28 = arith.constant dense<0.000000e+00> : vector<8x128xf32>
    %81 = tpu.matmul %79, %70, %cst_28 {dimension_numbers = #tpu.dot_dimension_numbers<[1], [0], [0], [1], [0, 0, 1, 1], [], []>} : vector<8x256xbf16>, vector<256x128xbf16>, vector<8x128xf32> -> vector<8x128xf32>
    %82 = arith.addf %80, %81 : vector<8x128xf32>
    %c0_29 = arith.constant 0 : index
    %c0_30 = arith.constant 0 : index
    %83 = vector.load %arg10[%c0_29, %c0_30] : memref<8x128xf32, #tpu.memory_space<vmem>>, vector<8x128xf32>
    tpu.vector_store %arg10[%c0_29, %c0_30], %82 {strides = array<i32>} : memref<8x128xf32, #tpu.memory_space<vmem>>, vector<8x128xf32>,
    return
  }
  func.func @transform_0(%arg0: i32, %arg1: memref<6xi32, #tpu.memory_space<smem>>) -> (i32, i32) {
    %c0_i32 = arith.constant 0 : i32
    %c0_i32_0 = arith.constant 0 : i32
    return %arg0, %c0_i32 : i32, i32
  }
  func.func @transform_1(%arg0: i32, %arg1: memref<6xi32, #tpu.memory_space<smem>>) -> (i32, i32) {
    %c0_i32 = arith.constant 0 : i32
    %c0_i32_0 = arith.constant 0 : i32
    return %arg0, %c0_i32 : i32, i32
  }
  func.func @transform_2(%arg0: i32, %arg1: memref<6xi32, #tpu.memory_space<smem>>) -> (i32, i32) {
    %c0_i32 = arith.constant 0 : i32
    %c0_i32_0 = arith.constant 0 : i32
    return %arg0, %c0_i32 : i32, i32
  }
  func.func @transform_3(%arg0: i32, %arg1: memref<6xi32, #tpu.memory_space<smem>>) -> (i32, i32) {
    %c0_i32 = arith.constant 0 : i32
    %c0_i32_0 = arith.constant 0 : i32
    return %c0_i32, %arg0 : i32, i32
  }
  func.func @transform_4(%arg0: i32, %arg1: memref<6xi32, #tpu.memory_space<smem>>) -> (i32, i32) {
    %c0_i32 = arith.constant 0 : i32
    %c0_i32_0 = arith.constant 0 : i32
    %c0_i32_1 = arith.constant 0 : i32
    return %c0_i32, %c0_i32_0 : i32, i32
  }
  func.func @transform_5(%arg0: i32, %arg1: memref<6xi32, #tpu.memory_space<smem>>) -> (i32, i32) {
    %0 = arith.index_cast %arg0 : i32 to index
    %1 = memref.load %arg1[%0] : memref<6xi32, #tpu.memory_space<smem>>
    %c0_i32 = arith.constant 0 : i32
    %c0_i32_0 = arith.constant 0 : i32
    return %1, %c0_i32 : i32, i32
  }
  func.func @transform_6(%arg0: i32, %arg1: memref<6xi32, #tpu.memory_space<smem>>) -> (i32, i32) {
    %c0_i32 = arith.constant 0 : i32
    %c0_i32_0 = arith.constant 0 : i32
    %c0_i32_1 = arith.constant 0 : i32
    return %c0_i32, %c0_i32_0 : i32, i32
  }
  func.func @transform_7(%arg0: i32, %arg1: memref<6xi32, #tpu.memory_space<smem>>) -> i32 {
    %c0_i32 = arith.constant 0 : i32
    %c0_i32_0 = arith.constant 0 : i32
    return %c0_i32 : i32
  }
  func.func @transform_8(%arg0: i32, %arg1: memref<6xi32, #tpu.memory_space<smem>>) -> (i32, i32) {
    %0 = arith.index_cast %arg0 : i32 to index
    %1 = memref.load %arg1[%0] : memref<6xi32, #tpu.memory_space<smem>>
    %c0_i32 = arith.constant 0 : i32
    %c0_i32_0 = arith.constant 0 : i32
    return %1, %c0_i32 : i32, i32
  }
}

</mosaic_0001>

<bundles_post_ra>
// kernel: custom-call.1
= control target key start
LH: loop header
LB: loop body
LE: loop exit
PB: predicated region body
PF: predicated region fallthrough
CT: control target
= control target key end

     0   :  { %s6_s0 = inlined_call_operand.vmem [shape: u32[6], index: 0, kind: output, shape index: {}]  }

// kernel: base_message_passing_layer.1
= control target key start
LH: loop header
LB: loop body
LE: loop exit
PB: predicated region body
PF: predicated region fallthrough
CT: control target
= control target key end

     0   :  { %s4139_s0 = inlined_call_operand.vmem [shape: s32[6], index: 0, kind: input, shape index: {}]   ;;  %s4140_s1 = inlined_call_operand.vmem [shape: bf16[1536,24], index: 1, kind: input, shape index: {}]   ;;  %s4141_s2 = inlined_call_operand.vmem [shape: s32[1536,1], index: 2, kind: input, shape index: {}]   ;;  %s4142_s3 = inlined_call_operand.vmem [shape: s32[1536,1], index: 3, kind: input, shape index: {}]   ;;  %s4143_s4 = inlined_call_operand.vmem [shape: s32[1,1536], index: 4, kind: input, shape index: {}]   ;;  %s4144_s5 = inlined_call_operand.vmem [shape: bf16[24,128], index: 5, kind: input, shape index: {}]   ;;  %s4145_s6 = inlined_call_operand.vmem [shape: bf16[16,128], index: 6, kind: input, shape index: {}]   ;;  %s4146_s7 = inlined_call_operand.vmem [shape: f32[1,128], index: 7, kind: input, shape index: {}]   ;;  %s4147_s8 = inlined_call_operand.<no memory space> [shape: f32[1], index: 8, kind: input, shape index: {}]   ;;  %s4148_s9 = inlined_call_operand.hbm [shape: f32[16,128], index: 9, kind: output, shape index: {}]  }
   0x1   :  { %s14_s11 = sshll.u32 %s4139_s0, 4  ;;  %18 = sst [smem:[#allocation4]] %s4147_s8  ;;  %s15_s11 = int_to_ptr.vmem [resolvable:$true] %s14_s11 }
   0x2   :  { %s3084_s14 = scalar_lea.vmem %s15_s11, 16  ;;  %p3089_p1 = scmp.lt.s32.totalorder %s15_s11, %s15_s11 }
   0x3   :  { %p3085_p0 = scmp.ne.s32.totalorder %s15_s11, %s3084_s14  ;;  %p3090_p2 = scmp.lt.s32.totalorder %s3084_s14, %s3084_s14 }
   0x5   :  { %p3091_p3 = por %p3090_p2, %p3089_p1 }
   0x7   :  { %p3092_p4 = pnand %p3091_p3, %p3085_p0 }
   0x9   :  { %3095 = shalt.err (!%p3092_p4)  }
   0xa   :  { %s3162_s15 = smov [#allocation3]  }
   0xb   :  { %17 = dma.vmem_to_smem %s15_s11, 16, %s3162_s15, [#allocation2] }
   0xc   :  { %3140 = dma.done.wait [#allocation2], 16 }
   0xd   :  { %3141 = vsyncadd [#allocation2], 4294967280 }
   0xe   :  { %20 = sfence }
   0xf   :  { %21 = vsyncpa [#allocation6], 0 }
  0x10   :  { %23 = vsyncpa [#allocation6 + $0x1], 0  ;;  %s3224_s0 = smov 0   ;;  %s3226_s16 = smov 0  }
  0x11   :  { %s3228_s8 = smov 0   ;;  %s3230_s17 = smov 0  }
  0x12 LB: > { %4166 = sst [smem:[#allocation10_spill]] %s3156_s8  ;;  %s3245_s18 = sadd.s32 4294967295, %s3160_s17   ;;  %s3160_s17 = sphi %s3230_s17, %s4200_s17   ;;  %s3156_s8 = sphi %s3228_s8, %s4202_s8   ;;  %s3152_s16 = sphi %s3226_s16, %s4204_s16   ;;  %s3148_s0 = sphi %s3224_s0, %s4203_s0  }
  0x13   : > { %s2461_s19 = sadd.s32 4294967294, %s3160_s17   ;;  %s3249_s20 = sadd.s32 1, %s3160_s17  }
  0x14   : > { %4167 = sst [smem:[#allocation11_spill]] %s3249_s20  ;;  %p243_p5 = scmp.ne.s32.totalorder %s3156_s8, %s3152_s16 }
  0x15   : > { %s228_s21 = sld [smem:[#allocation3 + %s3160_s17]]  ;;  %p244_p6 = scmp.eq.s32.totalorder %s3245_s18, 5 }
  0x16   : > { %s229_s22 = sld [smem:[#allocation3 + %s3249_s20]]  ;;  %p249_p7 = scmp.ne.s32.totalorder %s3152_s16, %s3148_s0 }
  0x17   : > { %p250_p8 = scmp.eq.s32.totalorder %s2461_s19, 5  ;;  %p3258_p9 = por %p244_p6, %p243_p5 }
  0x18   : > { %p2464_p10 = scmp.ge.s32.totalorder %s3160_s17, 1  ;;  %p321_p12 = scmp.lt.s32.totalorder %s3160_s17, 7 }
  0x19   : > { %p3263_p11 = por %p250_p8, %p249_p7  ;;  %s233_s25 = sadd.s32 1, %s3156_s8 }
  0x1a   : > { %p322_p13 = pnand %p2464_p10, %p321_p12 }
  0x1c   : > { %s230_s26 = ssub.s32 %s228_s21, %s229_s22  ;;  %325 = sbr.rel (%p322_p13) target bundleno = 1009 (0x3f1), region = 52 }
  0x1d   : > { %p231_p0 = scmp.eq.s32.totalorder %s230_s26, 0 }
  0x1f   : > { %s3270_s27 = scalar_select %p231_p0, %s3156_s8, %s233_s25  }
  0x21   : > { %4170 = sst [smem:[#allocation12_spill]] %s3270_s27 }
  0x23   : > { %s4149_s28 = sand.u32 1, %s3152_s16   ;;  %s2466_s29 = sshll.u32 %s3245_s18, 5 }
  0x24   : > { %s2465_s30 = sshll.u32 %s4149_s28, 3  ;;  %p375_p1 = scmp.lt.s32.totalorder %s2466_s29, 191 }
  0x25   : > { %s2472_s10 = sshll.u32 %s3245_s18, 1  ;;  %s397_s11 = sld [smem:[#allocation3 + %s3245_s18]] }
  0x26   : > { %s4206_s29 = smov (!%p375_p1, %s2466_s29), 191  ;;  %p393_p2 = scmp.lt.s32.totalorder %s2472_s10, 11 }
  0x27   : > { %s2467_s12 = sshll.u32 %s4206_s29, 2  ;;  %s2469_s13 = sshll.u32 %s4206_s29, 3 }
  0x28   : > { %s3281_s19 = scalar_lea.vmem %s4140_s1, %s2467_s12  ;;  %s3286_s25 = scalar_lea.vmem %s4141_s2, %s2469_s13 }
  0x29   : > { %s3291_s27 = scalar_lea.vmem %s4142_s3, %s2469_s13  ;;  %s4208_s10 = smov (!%p393_p2, %s2472_s10), 11 }
  0x2a   : > { %s2474_s8 = sadd.s32 4294967295, %s3245_s18  ;;  %s395_s14 = scalar_lea.vmem %s4143_s4, %s4208_s10 }
  0x2b   : > { %p398_p3 = scmp.lt.s32.totalorder %s397_s11, 1  ;;  %s3301_s12 = sld [smem:[#allocation3 + %s3245_s18]] }
  0x2c   : > { %p407_p4 = scmp.gt.s32.totalorder %s2474_s8, 0  ;;  %p410_p5 = scmp.eq.s32.totalorder %s3245_s18, 0 }
  0x2d   : > { %s4210_s11 = smov (!%p398_p3, %s397_s11), 1  ;;  %s3310_s26 = scalar_lea.vmem [#allocation5], %s2465_s30 }
  0x2e   : > { %s4212_s8 = smov (!%p407_p4, %s2474_s8), 0  ;;  %s2473_s15 = sshll.u32 %s4210_s11, 2 }
  0x2f   : > { %s3306_s13 = scalar_lea.vmem %s4145_s6, %s2473_s15  ;;  %s409_s22 = sld [smem:[#allocation3 + %s4212_s8]] }
  0x35   : > { %p411_p6 = scmp.ne.s32.totalorder %s3301_s12, %s409_s22 }
  0x37   : > { %p412_p7 = por %p411_p6, %p410_p5 }
  0x38   : > { %v3163_v0 = vmov (%p412_p7), 0.0  }
  0x39   : > { %415 = sbr.rel (!%p412_p7) target bundleno = 64 (0x40), region = 56  ;;  %416 = vst [vmem:[%s3310_s26] sm:$0xff] (%p412_p7), %v3163_v0 }
  0x40 PF: > { %v421_v1 = vld [vmem:[%s3286_s25 + $0x10] sm:$0xff]  ;;  %v419_v2 = vld [vmem:[%s3286_s25] sm:$0xff]  ;;  %v3164_v3 = vmov 0   ;;  %v422_v4 = vld [vmem:[%s3286_s25 + $0x18] sm:$0xff]  ;;  %vm1099_vm0 = vcmask 1043456   ;;  %s2523_s29 = sshll.u32 %s3301_s12, 3 }
  0x41   : > { %2809 = vset.pattern.permute.xlu1 %v3164_v3  ;;  %2808 = vset.pattern.permute.xlu0 %v3164_v3  ;;  %v420_v5 = vld [vmem:[%s3286_s25 + $0x8] sm:$0xff]  ;;  %v806_v7 = vld [vmem:[%s3291_s27] sm:$0xff]  ;;  %v809_v8 = vld [vmem:[%s3291_s27 + $0x18] sm:$0xff]  ;;  %vm1273_vm5 = vcmask 195584   ;;  %vm1050_vm8 = vcmask 64512   ;;  %s4214_s18 = smov (!%p3258_p9, %s3245_s18), 0 }
  0x42   : > { %458 = vperm.xlu1 %2809, %v421_v1   ;;  %452 = vperm.xlu0 %2808, %v419_v2   ;;  %v807_v6 = vld [vmem:[%s3291_s27 + $0x8] sm:$0xff]  ;;  %v808_v9 = vld [vmem:[%s3291_s27 + $0x10] sm:$0xff]  ;;  %v423_v11 = vld [vmem:[%s3286_s25 + $0x20] sm:$0xff]  ;;  %s2762_s10 = scalar_select %p3258_p9, [#allocation3], [#allocation7] }
  0x43   : > { %v424_v10 = vld [vmem:[%s3286_s25 + $0x28] sm:$0xff]  ;;  %v426_v12 = vld [vmem:[%s3286_s25 + $0x38] sm:$0xff]  ;;  %v425_v13 = vld [vmem:[%s3286_s25 + $0x30] sm:$0xff]  ;;  %s2357_s28 = sshll.u32 %s3310_s26, 4  ;;  %s3167_s11 = smov [#allocation5]   ;;  %s4096_s28 = int_to_ptr.vmem [resolvable:$true] %s2357_s28 }
  0x44   : > { %v811_v14 = vld [vmem:[%s3291_s27 + $0x28] sm:$0xff]  ;;  %v2810_v15 = vld [vmem:[%s4144_s5] sm:$0xff]   ;;  %v813_v18 = vld [vmem:[%s3291_s27 + $0x38] sm:$0xff]  ;;  %s3096_s30 = scalar_lea.vmem %s4096_s28, 128 }
  0x45   : > { %v810_v16 = vld [vmem:[%s3291_s27 + $0x20] sm:$0xff]  ;;  %v2812_v17 = vld [vmem:[%s4144_s5 + $0x8] ss:$0 sps:$4 sm:$0xff]   ;;  %2692 = vmatprep.subr.bf16.mxu0 %v2810_v15  ;;  %v812_v19 = vld [vmem:[%s3291_s27 + $0x30] sm:$0xff]  ;;  %p3097_p8 = scmp.ne.s32.totalorder %s4096_s28, %s3096_s30 }
  0x46   : > { %461 = vperm.xlu1 %2809, %v422_v4   ;;  %455 = vperm.xlu0 %2808, %v420_v5   ;;  %v1049_v20 = vld [vmem:[%s3306_s13] sm:$0xf]  ;;  %v1323_v21 = vsel %vm1099_vm0, %v2812_v17, 0  ;;  %v428_v23 = vld [vmem:[%s3286_s25 + $0x48] sm:$0xff]  ;;  %v430_v25 = vld [vmem:[%s3286_s25 + $0x58] sm:$0xff] }
  0x47   : > { %2693 = vmatpush3.bf16.msra.mxu0 %v2810_v15  ;;  %v1101_v22 = vsel %vm1099_vm0, %v1049_v20, 0  ;;  %2760 = vmatprep.subr.msk.bf16.mxu1 %vm1099_vm0, %v1049_v20  ;;  %v427_v24 = vld [vmem:[%s3286_s25 + $0x40] sm:$0xff]  ;;  %v429_v26 = vld [vmem:[%s3286_s25 + $0x50] sm:$0xff]  ;;  %v815_v27 = vld [vmem:[%s3291_s27 + $0x48] sm:$0xff]  ;;  %p3098_p10 = pnand %p3097_p8, %p3258_p9 }
  0x48   : > { %2761 = vmatprep.subr.msk.bf16.mxu0 %vm1099_vm0, %v2812_v17  ;;  %2659 = vmatpush3.bf16.msra.mxu1 %v1101_v22  ;;  %v814_v28 = vld [vmem:[%s3291_s27 + $0x40] sm:$0xff]  ;;  %v817_v29 = vld [vmem:[%s3291_s27 + $0x58] sm:$0xff]  ;;  %v816_v30 = vld [vmem:[%s3291_s27 + $0x50] sm:$0xff]  ;;  %v3165_v17 = vmov 0.0  }
  0x49   : > { %v432_v31 = vld [vmem:[%s3286_s25 + $0x68] sm:$0xff]  ;;  %v431_v32 = vld [vmem:[%s3286_s25 + $0x60] sm:$0xff]  ;;  %v434_v33 = vld [vmem:[%s3286_s25 + $0x78] sm:$0xff]  ;;  %p3099_p12 = pneg %p3098_p10 }
  0x4a   : > { %842 = vperm.xlu1 %2809, %v807_v6   ;;  %839 = vperm.xlu0 %2808, %v806_v7   ;;  %v433_v34 = vld [vmem:[%s3286_s25 + $0x70] sm:$0xff]  ;;  %v819_v35 = vld [vmem:[%s3291_s27 + $0x68] sm:$0xff]  ;;  %v818_v36 = vld [vmem:[%s3291_s27 + $0x60] sm:$0xff]  ;;  %v4153_v7 = vlaneseq }
  0x4b   : > { %2695 = vmatpush3.bf16.msra.mxu0 %v1323_v21  ;;  %v821_v37 = vld [vmem:[%s3291_s27 + $0x78] sm:$0xff]  ;;  %v820_v38 = vld [vmem:[%s3291_s27 + $0x70] sm:$0xff]  ;;  %v436_v39 = vld [vmem:[%s3286_s25 + $0x88] sm:$0xff] }
  0x4c   : > { %v435_v40 = vld [vmem:[%s3286_s25 + $0x80] sm:$0xff]  ;;  %v438_v41 = vld [vmem:[%s3286_s25 + $0x98] sm:$0xff]  ;;  %v437_v42 = vld [vmem:[%s3286_s25 + $0x90] sm:$0xff] }
  0x4d   : > { %v823_v43 = vld [vmem:[%s3291_s27 + $0x88] sm:$0xff]  ;;  %v822_v44 = vld [vmem:[%s3291_s27 + $0x80] sm:$0xff]  ;;  %v825_v45 = vld [vmem:[%s3291_s27 + $0x98] sm:$0xff] }
  0x4e   : > { %848 = vperm.xlu1 %2809, %v809_v8   ;;  %845 = vperm.xlu0 %2808, %v808_v9   ;;  %v824_v46 = vld [vmem:[%s3291_s27 + $0x90] sm:$0xff]  ;;  %v440_v47 = vld [vmem:[%s3286_s25 + $0xa8] sm:$0xff]  ;;  %v439_v48 = vld [vmem:[%s3286_s25 + $0xa0] sm:$0xff]  ;;  %v3385_v8 = vand.u32 127, %v4153_v7 }
  0x4f   : > { %v442_v49 = vld [vmem:[%s3286_s25 + $0xb8] sm:$0xff]  ;;  %v441_v50 = vld [vmem:[%s3286_s25 + $0xb0] sm:$0xff]  ;;  %v827_v51 = vld [vmem:[%s3291_s27 + $0xa8] sm:$0xff] }
  0x50   : > { %v826_v52 = vld [vmem:[%s3291_s27 + $0xa0] sm:$0xff]  ;;  %v829_v53 = vld [vmem:[%s3291_s27 + $0xb8] sm:$0xff]  ;;  %v828_v54 = vld [vmem:[%s3291_s27 + $0xb0] sm:$0xff] }
  0x51   : > { %v444_v55 = vld [vmem:[%s3286_s25 + $0xc8] sm:$0xff]  ;;  %v443_v56 = vld [vmem:[%s3286_s25 + $0xc0] sm:$0xff]  ;;  %v446_v57 = vld [vmem:[%s3286_s25 + $0xd8] sm:$0xff] }
  0x52   : > { %467 = vperm.xlu1 %2809, %v424_v10   ;;  %464 = vperm.xlu0 %2808, %v423_v11   ;;  %v445_v58 = vld [vmem:[%s3286_s25 + $0xd0] sm:$0xff]  ;;  %v831_v59 = vld [vmem:[%s3291_s27 + $0xc8] sm:$0xff]  ;;  %v830_v60 = vld [vmem:[%s3291_s27 + $0xc0] sm:$0xff]  ;;  %v3388_v11 = vstv %s2523_s29  ;;  %s3100_s29 = sshll.u32 %s3167_s11, 4  ;;  %s3101_s29 = int_to_ptr.vmem [resolvable:$false] %s3100_s29 }
  0x53   : > { %v833_v61 = vld [vmem:[%s3291_s27 + $0xd8] sm:$0xff]  ;;  %v832_v62 = vld [vmem:[%s3291_s27 + $0xd0] sm:$0xff]  ;;  %v448_v63 = vld [vmem:[%s3286_s25 + $0xe8] sm:$0xff]  ;;  %v3397_v15 = vadd.s32 %v3388_v11, %v3385_v8  ;;  %p3103_p13 = scmp.lt.s32.totalorder %s4096_s28, %s3101_s29 }
  0x54   : > { %v447_v0 = vld [vmem:[%s3286_s25 + $0xe0] sm:$0xff]  ;;  %v450_v1 = vld [vmem:[%s3286_s25 + $0xf8] sm:$0xff]  ;;  %v449_v2 = vld [vmem:[%s3286_s25 + $0xf0] sm:$0xff]  ;;  %s1909_s25 = sld [smem:[#allocation4]] }
  0x55   : > { %v835_v3 = vld [vmem:[%s3291_s27 + $0xe8] sm:$0xff]  ;;  %v834_v4 = vld [vmem:[%s3291_s27 + $0xe0] sm:$0xff]  ;;  %v837_v5 = vld [vmem:[%s3291_s27 + $0xf8] sm:$0xff] }
  0x56   : > { %473 = vperm.xlu1 %2809, %v426_v12   ;;  %470 = vperm.xlu0 %2808, %v425_v13   ;;  %v836_v6 = vld [vmem:[%s3291_s27 + $0xf0] sm:$0xff]  ;;  %s3102_s27 = scalar_lea.vmem %s3101_s29, 256 }
  0x57   : > { %p3104_p0 = scmp.lt.s32.totalorder %s3102_s27, %s3096_s30 }
  0x59   : > { %p3105_p1 = por %p3104_p0, %p3103_p13 }
  0x5a   : > { %854 = vperm.xlu1 %2809, %v811_v14   ;;  %851 = vperm.xlu0 %2808, %v810_v16   ;;  %v2811_v14 = vld [vmem:[%s3281_s19 + $0x8] sm:$0xff]   ;;  %v2813_v16 = vld [vmem:[%s3281_s19] sm:$0xff]  }
  0x5b   : > { %p3106_p2 = pnand %p3105_p1, %p3099_p12 }
  0x5e   : > { %860 = vperm.xlu1 %2809, %v813_v18   ;;  %857 = vperm.xlu0 %2808, %v812_v19  }
  0x62   : > { %479 = vperm.xlu1 %2809, %v428_v23   ;;  %476 = vperm.xlu0 %2808, %v427_v24  }
  0x66   : > { %485 = vperm.xlu1 %2809, %v430_v25   ;;  %482 = vperm.xlu0 %2808, %v429_v26  }
  0x6a   : > { %866 = vperm.xlu1 %2809, %v815_v27   ;;  %863 = vperm.xlu0 %2808, %v814_v28  }
  0x6e   : > { %872 = vperm.xlu1 %2809, %v817_v29   ;;  %869 = vperm.xlu0 %2808, %v816_v30  }
  0x72   : > { %491 = vperm.xlu1 %2809, %v432_v31   ;;  %488 = vperm.xlu0 %2808, %v431_v32  }
  0x76   : > { %497 = vperm.xlu1 %2809, %v434_v33   ;;  %494 = vperm.xlu0 %2808, %v433_v34  }
  0x7a   : > { %878 = vperm.xlu1 %2809, %v819_v35   ;;  %875 = vperm.xlu0 %2808, %v818_v36  }
  0x7e   : > { %884 = vperm.xlu1 %2809, %v821_v37   ;;  %881 = vperm.xlu0 %2808, %v820_v38   ;;  %v2814_v38 = vld [vmem:[%s3281_s19 + $0x10] sm:$0xff]  }
  0x82   : > { %503 = vperm.xlu1 %2809, %v436_v39   ;;  %500 = vperm.xlu0 %2808, %v435_v40  }
  0x86   : > { %509 = vperm.xlu1 %2809, %v438_v41   ;;  %506 = vperm.xlu0 %2808, %v437_v42  }
  0x8a   : > { %890 = vperm.xlu1 %2809, %v823_v43   ;;  %887 = vperm.xlu0 %2808, %v822_v44  }
  0x8e   : > { %896 = vperm.xlu1 %2809, %v825_v45   ;;  %893 = vperm.xlu0 %2808, %v824_v46   ;;  %v2815_v45 = vld [vmem:[%s3281_s19 + $0x18] sm:$0xff]  }
  0x92   : > { %515 = vperm.xlu1 %2809, %v440_v47   ;;  %512 = vperm.xlu0 %2808, %v439_v48  }
  0x96   : > { %521 = vperm.xlu1 %2809, %v442_v49   ;;  %518 = vperm.xlu0 %2808, %v441_v50  }
  0x9a   : > { %902 = vperm.xlu1 %2809, %v827_v51   ;;  %899 = vperm.xlu0 %2808, %v826_v52  }
  0x9e   : > { %908 = vperm.xlu1 %2809, %v829_v53   ;;  %905 = vperm.xlu0 %2808, %v828_v54  }
  0xa2   : > { %527 = vperm.xlu1 %2809, %v444_v55   ;;  %524 = vperm.xlu0 %2808, %v443_v56  }
  0xa6   : > { %533 = vperm.xlu1 %2809, %v446_v57   ;;  %530 = vperm.xlu0 %2808, %v445_v58  }
  0xaa   : > { %914 = vperm.xlu1 %2809, %v831_v59   ;;  %911 = vperm.xlu0 %2808, %v830_v60  }
  0xae   : > { %920 = vperm.xlu1 %2809, %v833_v61   ;;  %917 = vperm.xlu0 %2808, %v832_v62   ;;  %v2816_v62 = vld [vmem:[%s3281_s19 + $0x20] sm:$0xff]  }
  0xb2   : > { %539 = vperm.xlu1 %2809, %v448_v63   ;;  %536 = vperm.xlu0 %2808, %v447_v0  }
  0xb6   : > { %545 = vperm.xlu1 %2809, %v450_v1   ;;  %542 = vperm.xlu0 %2808, %v449_v2  }
  0xba   : > { %926 = vperm.xlu1 %2809, %v835_v3   ;;  %923 = vperm.xlu0 %2808, %v834_v4  }
  0xbe   : > { %932 = vperm.xlu1 %2809, %v837_v5   ;;  %929 = vperm.xlu0 %2808, %v836_v6   ;;  %v2817_v5 = vld [vmem:[%s3281_s19 + $0x28] sm:$0xff]  }
  0xc1   : > { %v459_v9 = vpop.permute.xlu1 %458  ;;  %v453_v10 = vpop.permute.xlu0 %452 }
  0xc2   : > { %vm549_vm1 = vcmp.eq.s32.totalorder %v459_v9, %v3385_v8  ;;  %vm547_vm2 = vcmp.eq.s32.totalorder %v453_v10, %v3385_v8 }
  0xc3   : > { %v2477_v18 = vsel %vm549_vm1, 1.0, %v3165_v17  ;;  %v2475_v19 = vsel %vm547_vm2, 1.0, %v3165_v17 }
  0xc5   : > { %v462_v12 = vpop.permute.xlu1 %461  ;;  %v456_v13 = vpop.permute.xlu0 %455 }
  0xc6   : > { %vm550_vm3 = vcmp.eq.s32.totalorder %v462_v12, %v3385_v8  ;;  %vm548_vm4 = vcmp.eq.s32.totalorder %v456_v13, %v3385_v8 }
  0xc7   : > { %v2478_v20 = vsel %vm550_vm3, 1.0, %v3165_v17  ;;  %v2476_v21 = vsel %vm548_vm4, 1.0, %v3165_v17 }
  0xc8   : > { %v644_v22 = vpack.c.bf16 %v2478_v20, %v2477_v18  ;;  %v643_v23 = vpack.c.bf16 %v2476_v21, %v2475_v19 }
  0xc9   : > { %v843_v24 = vpop.permute.xlu1 %842  ;;  %v840_v25 = vpop.permute.xlu0 %839 }
  0xca   : > { %v788_v26 = vadd.bf16 %v2811_v14, %v644_v22  ;;  %vm935_vm6 = vcmp.eq.s32.totalorder %v843_v24, %v3397_v15  ;;  %vm934_vm7 = vcmp.eq.s32.totalorder %v840_v25, %v3397_v15  ;;  %v787_v27 = vadd.bf16 %v2813_v16, %v643_v23 }
  0xcb   : > { %v2525_v28 = vsel %vm935_vm6, 1.0, %v3165_v17  ;;  %v2524_v29 = vsel %vm934_vm7, 1.0, %v3165_v17 }
  0xcc   : > { %2696 = vmatprep.mubr.msk.bf16.mxu0 %vm1273_vm5, %v787_v27  ;;  %v1030_v30 = vpack.c.bf16 %v2525_v28, %v2524_v29  ;;  %v2818_v27 = vld [vmem:[%s3281_s19 + $0x30] sm:$0xff]  }
  0xcd   : > { %v849_v31 = vpop.permute.xlu1 %848  ;;  %v846_v32 = vpop.permute.xlu0 %845  ;;  %2697 = vmatmul.mubr.msk.bf16.vlgmr.msra.gmra.mrb[0].mxu0 %vm1273_vm5, %v788_v26 }
  0xce   : > { %vm937_vm9 = vcmp.eq.s32.totalorder %v849_v31, %v3397_v15  ;;  %vm936_vm10 = vcmp.eq.s32.totalorder %v846_v32, %v3397_v15  ;;  %2660 = vmatprep.mubr.msk.bf16.mxu1 %vm1050_vm8, %v1030_v30 }
  0xcf   : > { %v2527_v33 = vsel %vm937_vm9, 1.0, %v3165_v17  ;;  %v2526_v34 = vsel %vm936_vm10, 1.0, %v3165_v17 }
  0xd0   : > { %v1031_v35 = vpack.c.bf16 %v2527_v33, %v2526_v34  ;;  %v2819_v34 = vld [vmem:[%s3281_s19 + $0x38] sm:$0xff]  }
  0xd1   : > { %v468_v36 = vpop.permute.xlu1 %467  ;;  %v465_v37 = vpop.permute.xlu0 %464 }
  0xd2   : > { %vm552_vm11 = vcmp.eq.s32.totalorder %v468_v36, %v3385_v8  ;;  %vm551_vm12 = vcmp.eq.s32.totalorder %v465_v37, %v3385_v8  ;;  %2661 = vmatmul.mubr.msk.bf16.vlgmr.msra.gmra.mrb[0].mxu1 %vm1050_vm8, %v1031_v35 }
  0xd3   : > { %v2480_v39 = vsel %vm552_vm11, 1.0, %v3165_v17  ;;  %v2479_v40 = vsel %vm551_vm12, 1.0, %v3165_v17 }
  0xd4   : > { %v645_v41 = vpack.c.bf16 %v2480_v39, %v2479_v40 }
  0xd5   : > { %v474_v42 = vpop.permute.xlu1 %473  ;;  %v471_v43 = vpop.permute.xlu0 %470 }
  0xd6   : > { %v789_v44 = vadd.bf16 %v2814_v38, %v645_v41  ;;  %vm554_vm13 = vcmp.eq.s32.totalorder %v474_v42, %v3385_v8  ;;  %vm553_vm14 = vcmp.eq.s32.totalorder %v471_v43, %v3385_v8 }
  0xd7   : > { %v2482_v46 = vsel %vm554_vm13, 1.0, %v3165_v17  ;;  %v2481_v47 = vsel %vm553_vm14, 1.0, %v3165_v17 }
  0xd8   : > { %v646_v48 = vpack.c.bf16 %v2482_v46, %v2481_v47  ;;  %2700 = vmatprep.mubr.msk.bf16.mxu0 %vm1273_vm5, %v789_v44 }
  0xd9   : > { %v855_v49 = vpop.permute.xlu1 %854  ;;  %v852_v50 = vpop.permute.xlu0 %851 }
  0xda   : > { %v790_v51 = vadd.bf16 %v2815_v45, %v646_v48  ;;  %vm939_vm15 = vcmp.eq.s32.totalorder %v855_v49, %v3397_v15  ;;  %vm938_vm0 = vcmp.eq.s32.totalorder %v852_v50, %v3397_v15 }
  0xdb   : > { %v2529_v52 = vsel %vm939_vm15, 1.0, %v3165_v17  ;;  %v2528_v53 = vsel %vm938_vm0, 1.0, %v3165_v17 }
  0xdc   : > { %v1032_v54 = vpack.c.bf16 %v2529_v52, %v2528_v53  ;;  %2701 = vmatmul.mubr.msk.bf16.gmra.mrb[4].mxu0 %vm1273_vm5, %v790_v51  ;;  %v2820_v51 = vld [vmem:[%s3281_s19 + $0x40] sm:$0xff]  }
  0xdd   : > { %v861_v55 = vpop.permute.xlu1 %860  ;;  %v858_v56 = vpop.permute.xlu0 %857 }
  0xde   : > { %vm941_vm1 = vcmp.eq.s32.totalorder %v861_v55, %v3397_v15  ;;  %vm940_vm2 = vcmp.eq.s32.totalorder %v858_v56, %v3397_v15  ;;  %2664 = vmatprep.mubr.msk.bf16.mxu1 %vm1050_vm8, %v1032_v54 }
  0xdf   : > { %v2531_v57 = vsel %vm941_vm1, 1.0, %v3165_v17  ;;  %v2530_v58 = vsel %vm940_vm2, 1.0, %v3165_v17 }
  0xe0   : > { %v1033_v59 = vpack.c.bf16 %v2531_v57, %v2530_v58  ;;  %v2821_v58 = vld [vmem:[%s3281_s19 + $0x48] sm:$0xff]  }
  0xe1   : > { %v480_v60 = vpop.permute.xlu1 %479  ;;  %v477_v61 = vpop.permute.xlu0 %476 }
  0xe2   : > { %vm556_vm3 = vcmp.eq.s32.totalorder %v480_v60, %v3385_v8  ;;  %vm555_vm4 = vcmp.eq.s32.totalorder %v477_v61, %v3385_v8  ;;  %2665 = vmatmul.mubr.msk.bf16.gmra.mrb[4].mxu1 %vm1050_vm8, %v1033_v59 }
  0xe3   : > { %v2484_v63 = vsel %vm556_vm3, 1.0, %v3165_v17  ;;  %v2483_v0 = vsel %vm555_vm4, 1.0, %v3165_v17 }
  0xe4   : > { %v647_v1 = vpack.c.bf16 %v2484_v63, %v2483_v0 }
  0xe5   : > { %v486_v2 = vpop.permute.xlu1 %485  ;;  %v483_v3 = vpop.permute.xlu0 %482 }
  0xe6   : > { %v791_v4 = vadd.bf16 %v2816_v62, %v647_v1  ;;  %vm558_vm6 = vcmp.eq.s32.totalorder %v486_v2, %v3385_v8  ;;  %vm557_vm7 = vcmp.eq.s32.totalorder %v483_v3, %v3385_v8 }
  0xe7   : > { %v2486_v6 = vsel %vm558_vm6, 1.0, %v3165_v17  ;;  %v2485_v9 = vsel %vm557_vm7, 1.0, %v3165_v17 }
  0xe8   : > { %v648_v10 = vpack.c.bf16 %v2486_v6, %v2485_v9  ;;  %2704 = vmatprep.mubr.msk.bf16.mxu0 %vm1273_vm5, %v791_v4 }
  0xe9   : > { %v867_v12 = vpop.permute.xlu1 %866  ;;  %v864_v13 = vpop.permute.xlu0 %863 }
  0xea   : > { %v792_v14 = vadd.bf16 %v2817_v5, %v648_v10  ;;  %vm943_vm9 = vcmp.eq.s32.totalorder %v867_v12, %v3397_v15  ;;  %vm942_vm10 = vcmp.eq.s32.totalorder %v864_v13, %v3397_v15 }
  0xeb   : > { %v2533_v16 = vsel %vm943_vm9, 1.0, %v3165_v17  ;;  %v2532_v18 = vsel %vm942_vm10, 1.0, %v3165_v17 }
  0xec   : > { %v1034_v19 = vpack.c.bf16 %v2533_v16, %v2532_v18  ;;  %2705 = vmatmul.mubr.msk.bf16.gmra.mrb[8].mxu0 %vm1273_vm5, %v792_v14  ;;  %v2822_v14 = vld [vmem:[%s3281_s19 + $0x50] sm:$0xff]  }
  0xed   : > { %v873_v20 = vpop.permute.xlu1 %872  ;;  %v870_v21 = vpop.permute.xlu0 %869 }
  0xee   : > { %vm945_vm11 = vcmp.eq.s32.totalorder %v873_v20, %v3397_v15  ;;  %vm944_vm12 = vcmp.eq.s32.totalorder %v870_v21, %v3397_v15  ;;  %2668 = vmatprep.mubr.msk.bf16.mxu1 %vm1050_vm8, %v1034_v19 }
  0xef   : > { %v2535_v22 = vsel %vm945_vm11, 1.0, %v3165_v17  ;;  %v2534_v23 = vsel %vm944_vm12, 1.0, %v3165_v17 }
  0xf0   : > { %v1035_v24 = vpack.c.bf16 %v2535_v22, %v2534_v23  ;;  %v2823_v23 = vld [vmem:[%s3281_s19 + $0x58] sm:$0xff]  }
  0xf1   : > { %v492_v25 = vpop.permute.xlu1 %491  ;;  %v489_v26 = vpop.permute.xlu0 %488 }
  0xf2   : > { %vm560_vm13 = vcmp.eq.s32.totalorder %v492_v25, %v3385_v8  ;;  %vm559_vm14 = vcmp.eq.s32.totalorder %v489_v26, %v3385_v8  ;;  %2669 = vmatmul.mubr.msk.bf16.gmra.mrb[8].mxu1 %vm1050_vm8, %v1035_v24 }
  0xf3   : > { %v2488_v28 = vsel %vm560_vm13, 1.0, %v3165_v17  ;;  %v2487_v29 = vsel %vm559_vm14, 1.0, %v3165_v17 }
  0xf4   : > { %v649_v30 = vpack.c.bf16 %v2488_v28, %v2487_v29 }
  0xf5   : > { %v498_v31 = vpop.permute.xlu1 %497  ;;  %v495_v32 = vpop.permute.xlu0 %494 }
  0xf6   : > { %v793_v33 = vadd.bf16 %v2818_v27, %v649_v30  ;;  %vm562_vm15 = vcmp.eq.s32.totalorder %v498_v31, %v3385_v8  ;;  %vm561_vm0 = vcmp.eq.s32.totalorder %v495_v32, %v3385_v8 }
  0xf7   : > { %v2490_v35 = vsel %vm562_vm15, 1.0, %v3165_v17  ;;  %v2489_v36 = vsel %vm561_vm0, 1.0, %v3165_v17 }
  0xf8   : > { %v650_v37 = vpack.c.bf16 %v2490_v35, %v2489_v36  ;;  %2708 = vmatprep.mubr.msk.bf16.mxu0 %vm1273_vm5, %v793_v33 }
  0xf9   : > { %v879_v38 = vpop.permute.xlu1 %878  ;;  %v876_v39 = vpop.permute.xlu0 %875 }
  0xfa   : > { %v794_v40 = vadd.bf16 %v2819_v34, %v650_v37  ;;  %vm947_vm1 = vcmp.eq.s32.totalorder %v879_v38, %v3397_v15  ;;  %vm946_vm2 = vcmp.eq.s32.totalorder %v876_v39, %v3397_v15 }
  0xfb   : > { %v2537_v41 = vsel %vm947_vm1, 1.0, %v3165_v17  ;;  %v2536_v42 = vsel %vm946_vm2, 1.0, %v3165_v17 }
  0xfc   : > { %v1036_v43 = vpack.c.bf16 %v2537_v41, %v2536_v42  ;;  %2709 = vmatmul.mubr.msk.bf16.gmra.mrb[12].mxu0 %vm1273_vm5, %v794_v40  ;;  %v2824_v40 = vld [vmem:[%s3281_s19 + $0x60] sm:$0xff]  }
  0xfd   : > { %v885_v44 = vpop.permute.xlu1 %884  ;;  %v882_v45 = vpop.permute.xlu0 %881 }
  0xfe   : > { %vm949_vm3 = vcmp.eq.s32.totalorder %v885_v44, %v3397_v15  ;;  %vm948_vm4 = vcmp.eq.s32.totalorder %v882_v45, %v3397_v15  ;;  %2672 = vmatprep.mubr.msk.bf16.mxu1 %vm1050_vm8, %v1036_v43 }
  0xff   : > { %v2539_v46 = vsel %vm949_vm3, 1.0, %v3165_v17  ;;  %v2538_v47 = vsel %vm948_vm4, 1.0, %v3165_v17 }
 0x100   : > { %v1037_v48 = vpack.c.bf16 %v2539_v46, %v2538_v47  ;;  %v2825_v47 = vld [vmem:[%s3281_s19 + $0x68] sm:$0xff]  }
 0x101   : > { %v504_v49 = vpop.permute.xlu1 %503  ;;  %v501_v50 = vpop.permute.xlu0 %500 }
 0x102   : > { %vm564_vm6 = vcmp.eq.s32.totalorder %v504_v49, %v3385_v8  ;;  %vm563_vm7 = vcmp.eq.s32.totalorder %v501_v50, %v3385_v8  ;;  %2673 = vmatmul.mubr.msk.bf16.gmra.mrb[12].mxu1 %vm1050_vm8, %v1037_v48 }
 0x103   : > { %v2492_v52 = vsel %vm564_vm6, 1.0, %v3165_v17  ;;  %v2491_v53 = vsel %vm563_vm7, 1.0, %v3165_v17 }
 0x104   : > { %v651_v54 = vpack.c.bf16 %v2492_v52, %v2491_v53 }
 0x105   : > { %v510_v55 = vpop.permute.xlu1 %509  ;;  %v507_v56 = vpop.permute.xlu0 %506 }
 0x106   : > { %v795_v57 = vadd.bf16 %v2820_v51, %v651_v54  ;;  %vm566_vm9 = vcmp.eq.s32.totalorder %v510_v55, %v3385_v8  ;;  %vm565_vm10 = vcmp.eq.s32.totalorder %v507_v56, %v3385_v8 }
 0x107   : > { %v2494_v59 = vsel %vm566_vm9, 1.0, %v3165_v17  ;;  %v2493_v60 = vsel %vm565_vm10, 1.0, %v3165_v17 }
 0x108   : > { %v652_v61 = vpack.c.bf16 %v2494_v59, %v2493_v60  ;;  %2712 = vmatprep.mubr.msk.bf16.mxu0 %vm1273_vm5, %v795_v57 }
 0x109   : > { %v891_v62 = vpop.permute.xlu1 %890  ;;  %v888_v63 = vpop.permute.xlu0 %887 }
 0x10a   : > { %v796_v0 = vadd.bf16 %v2821_v58, %v652_v61  ;;  %vm951_vm11 = vcmp.eq.s32.totalorder %v891_v62, %v3397_v15  ;;  %vm950_vm12 = vcmp.eq.s32.totalorder %v888_v63, %v3397_v15 }
 0x10b   : > { %v2541_v1 = vsel %vm951_vm11, 1.0, %v3165_v17  ;;  %v2540_v2 = vsel %vm950_vm12, 1.0, %v3165_v17 }
 0x10c   : > { %v1038_v3 = vpack.c.bf16 %v2541_v1, %v2540_v2  ;;  %2713 = vmatmul.mubr.msk.bf16.gmra.mrb[16].mxu0 %vm1273_vm5, %v796_v0  ;;  %v2826_v0 = vld [vmem:[%s3281_s19 + $0x70] sm:$0xff]  }
 0x10d   : > { %v897_v4 = vpop.permute.xlu1 %896  ;;  %v894_v5 = vpop.permute.xlu0 %893 }
 0x10e   : > { %vm953_vm13 = vcmp.eq.s32.totalorder %v897_v4, %v3397_v15  ;;  %vm952_vm14 = vcmp.eq.s32.totalorder %v894_v5, %v3397_v15  ;;  %2676 = vmatprep.mubr.msk.bf16.mxu1 %vm1050_vm8, %v1038_v3 }
 0x10f   : > { %v2543_v6 = vsel %vm953_vm13, 1.0, %v3165_v17  ;;  %v2542_v9 = vsel %vm952_vm14, 1.0, %v3165_v17 }
 0x110   : > { %v1039_v10 = vpack.c.bf16 %v2543_v6, %v2542_v9  ;;  %v2827_v9 = vld [vmem:[%s3281_s19 + $0x78] sm:$0xff]  }
 0x111   : > { %v516_v12 = vpop.permute.xlu1 %515  ;;  %v513_v13 = vpop.permute.xlu0 %512 }
 0x112   : > { %vm568_vm15 = vcmp.eq.s32.totalorder %v516_v12, %v3385_v8  ;;  %vm567_vm0 = vcmp.eq.s32.totalorder %v513_v13, %v3385_v8  ;;  %2677 = vmatmul.mubr.msk.bf16.gmra.mrb[16].mxu1 %vm1050_vm8, %v1039_v10 }
 0x113   : > { %v2496_v16 = vsel %vm568_vm15, 1.0, %v3165_v17  ;;  %v2495_v18 = vsel %vm567_vm0, 1.0, %v3165_v17 }
 0x114   : > { %v653_v19 = vpack.c.bf16 %v2496_v16, %v2495_v18 }
 0x115   : > { %v522_v20 = vpop.permute.xlu1 %521  ;;  %v519_v21 = vpop.permute.xlu0 %518 }
 0x116   : > { %v797_v22 = vadd.bf16 %v2822_v14, %v653_v19  ;;  %vm570_vm1 = vcmp.eq.s32.totalorder %v522_v20, %v3385_v8  ;;  %vm569_vm2 = vcmp.eq.s32.totalorder %v519_v21, %v3385_v8 }
 0x117   : > { %v2498_v24 = vsel %vm570_vm1, 1.0, %v3165_v17  ;;  %v2497_v25 = vsel %vm569_vm2, 1.0, %v3165_v17 }
 0x118   : > { %v654_v26 = vpack.c.bf16 %v2498_v24, %v2497_v25  ;;  %2716 = vmatprep.mubr.msk.bf16.mxu0 %vm1273_vm5, %v797_v22 }
 0x119   : > { %v903_v27 = vpop.permute.xlu1 %902  ;;  %v900_v28 = vpop.permute.xlu0 %899 }
 0x11a   : > { %v798_v29 = vadd.bf16 %v2823_v23, %v654_v26  ;;  %vm955_vm3 = vcmp.eq.s32.totalorder %v903_v27, %v3397_v15  ;;  %vm954_vm4 = vcmp.eq.s32.totalorder %v900_v28, %v3397_v15 }
 0x11b   : > { %v2545_v30 = vsel %vm955_vm3, 1.0, %v3165_v17  ;;  %v2544_v31 = vsel %vm954_vm4, 1.0, %v3165_v17 }
 0x11c   : > { %v1040_v32 = vpack.c.bf16 %v2545_v30, %v2544_v31  ;;  %2717 = vmatmul.mubr.msk.bf16.gmra.mrb[20].mxu0 %vm1273_vm5, %v798_v29 }
 0x11d   : > { %v909_v33 = vpop.permute.xlu1 %908  ;;  %v906_v34 = vpop.permute.xlu0 %905 }
 0x11e   : > { %vm957_vm6 = vcmp.eq.s32.totalorder %v909_v33, %v3397_v15  ;;  %vm956_vm7 = vcmp.eq.s32.totalorder %v906_v34, %v3397_v15  ;;  %2680 = vmatprep.mubr.msk.bf16.mxu1 %vm1050_vm8, %v1040_v32 }
 0x11f   : > { %v2547_v35 = vsel %vm957_vm6, 1.0, %v3165_v17  ;;  %v2546_v36 = vsel %vm956_vm7, 1.0, %v3165_v17 }
 0x120   : > { %v1041_v37 = vpack.c.bf16 %v2547_v35, %v2546_v36 }
 0x121   : > { %v528_v38 = vpop.permute.xlu1 %527  ;;  %v525_v39 = vpop.permute.xlu0 %524 }
 0x122   : > { %vm572_vm9 = vcmp.eq.s32.totalorder %v528_v38, %v3385_v8  ;;  %vm571_vm10 = vcmp.eq.s32.totalorder %v525_v39, %v3385_v8  ;;  %2681 = vmatmul.mubr.msk.bf16.gmra.mrb[20].mxu1 %vm1050_vm8, %v1041_v37 }
 0x123   : > { %v2500_v41 = vsel %vm572_vm9, 1.0, %v3165_v17  ;;  %v2499_v42 = vsel %vm571_vm10, 1.0, %v3165_v17 }
 0x124   : > { %v655_v43 = vpack.c.bf16 %v2500_v41, %v2499_v42 }
 0x125   : > { %v534_v44 = vpop.permute.xlu1 %533  ;;  %v531_v45 = vpop.permute.xlu0 %530 }
 0x126   : > { %v799_v46 = vadd.bf16 %v2824_v40, %v655_v43  ;;  %vm574_vm11 = vcmp.eq.s32.totalorder %v534_v44, %v3385_v8  ;;  %vm573_vm12 = vcmp.eq.s32.totalorder %v531_v45, %v3385_v8 }
 0x127   : > { %v2502_v48 = vsel %vm574_vm11, 1.0, %v3165_v17  ;;  %v2501_v49 = vsel %vm573_vm12, 1.0, %v3165_v17 }
 0x128   : > { %v656_v50 = vpack.c.bf16 %v2502_v48, %v2501_v49  ;;  %2720 = vmatprep.mubr.msk.bf16.mxu0 %vm1273_vm5, %v799_v46 }
 0x129   : > { %v915_v51 = vpop.permute.xlu1 %914  ;;  %v912_v52 = vpop.permute.xlu0 %911 }
 0x12a   : > { %v800_v53 = vadd.bf16 %v2825_v47, %v656_v50  ;;  %vm959_vm13 = vcmp.eq.s32.totalorder %v915_v51, %v3397_v15  ;;  %vm958_vm14 = vcmp.eq.s32.totalorder %v912_v52, %v3397_v15 }
 0x12b   : > { %v2549_v54 = vsel %vm959_vm13, 1.0, %v3165_v17  ;;  %v2548_v55 = vsel %vm958_vm14, 1.0, %v3165_v17 }
 0x12c   : > { %v1042_v56 = vpack.c.bf16 %v2549_v54, %v2548_v55  ;;  %2721 = vmatmul.mubr.msk.bf16.gmra.mrb[24].mxu0 %vm1273_vm5, %v800_v53 }
 0x12d   : > { %v921_v57 = vpop.permute.xlu1 %920  ;;  %v918_v58 = vpop.permute.xlu0 %917 }
 0x12e   : > { %vm961_vm15 = vcmp.eq.s32.totalorder %v921_v57, %v3397_v15  ;;  %vm960_vm0 = vcmp.eq.s32.totalorder %v918_v58, %v3397_v15  ;;  %2684 = vmatprep.mubr.msk.bf16.mxu1 %vm1050_vm8, %v1042_v56 }
 0x12f   : > { %v2551_v59 = vsel %vm961_vm15, 1.0, %v3165_v17  ;;  %v2550_v60 = vsel %vm960_vm0, 1.0, %v3165_v17 }
 0x130   : > { %v1043_v61 = vpack.c.bf16 %v2551_v59, %v2550_v60 }
 0x131   : > { %v540_v62 = vpop.permute.xlu1 %539  ;;  %v537_v63 = vpop.permute.xlu0 %536 }
 0x132   : > { %vm576_vm1 = vcmp.eq.s32.totalorder %v540_v62, %v3385_v8  ;;  %vm575_vm2 = vcmp.eq.s32.totalorder %v537_v63, %v3385_v8  ;;  %2685 = vmatmul.mubr.msk.bf16.gmra.mrb[24].mxu1 %vm1050_vm8, %v1043_v61 }
 0x133   : > { %v2504_v1 = vsel %vm576_vm1, 1.0, %v3165_v17  ;;  %v2503_v2 = vsel %vm575_vm2, 1.0, %v3165_v17 }
 0x134   : > { %v657_v3 = vpack.c.bf16 %v2504_v1, %v2503_v2 }
 0x135   : > { %v546_v4 = vpop.permute.xlu1 %545  ;;  %v543_v5 = vpop.permute.xlu0 %542 }
 0x136   : > { %v801_v6 = vadd.bf16 %v2826_v0, %v657_v3  ;;  %vm578_vm3 = vcmp.eq.s32.totalorder %v546_v4, %v3385_v8  ;;  %vm577_vm4 = vcmp.eq.s32.totalorder %v543_v5, %v3385_v8 }
 0x137   : > { %v2506_v10 = vsel %vm578_vm3, 1.0, %v3165_v17  ;;  %v2505_v12 = vsel %vm577_vm4, 1.0, %v3165_v17 }
 0x138   : > { %v658_v13 = vpack.c.bf16 %v2506_v10, %v2505_v12  ;;  %2724 = vmatprep.mubr.msk.bf16.mxu0 %vm1273_vm5, %v801_v6 }
 0x139   : > { %v927_v14 = vpop.permute.xlu1 %926  ;;  %v924_v16 = vpop.permute.xlu0 %923 }
 0x13a   : > { %v802_v18 = vadd.bf16 %v2827_v9, %v658_v13  ;;  %vm963_vm6 = vcmp.eq.s32.totalorder %v927_v14, %v3397_v15  ;;  %vm962_vm7 = vcmp.eq.s32.totalorder %v924_v16, %v3397_v15 }
 0x13b   : > { %v2553_v19 = vsel %vm963_vm6, 1.0, %v3165_v17  ;;  %v2552_v20 = vsel %vm962_vm7, 1.0, %v3165_v17 }
 0x13c   : > { %v1044_v21 = vpack.c.bf16 %v2553_v19, %v2552_v20  ;;  %2725 = vmatmul.mubr.msk.bf16.gmra.mrb[28].mxu0 %vm1273_vm5, %v802_v18 }
 0x13d   : > { %v933_v8 = vpop.permute.xlu1 %932  ;;  %v930_v22 = vpop.permute.xlu0 %929 }
 0x13e   : > { %vm965_vm9 = vcmp.eq.s32.totalorder %v933_v8, %v3397_v15  ;;  %vm964_vm10 = vcmp.eq.s32.totalorder %v930_v22, %v3397_v15  ;;  %2688 = vmatprep.mubr.msk.bf16.mxu1 %vm1050_vm8, %v1044_v21 }
 0x13f   : > { %v2555_v23 = vsel %vm965_vm9, 1.0, %v3165_v17  ;;  %v2554_v24 = vsel %vm964_vm10, 1.0, %v3165_v17 }
 0x140   : > { %v1045_v25 = vpack.c.bf16 %v2555_v23, %v2554_v24 }
 0x142   : > { %2689 = vmatmul.mubr.msk.bf16.gmra.mrb[28].mxu1 %vm1050_vm8, %v1045_v25 }
 0x1a0   : > { %v2698_v26 = vpop.f32.mrb[0].mxu0 }
 0x1a1   : > { %v1359_v27 = vpop.f32.mrb[1].mxu0 }
 0x1a2   : > { %v2699_v28 = vpop.f32.mrb[2].mxu0 }
 0x1a3   : > { %v1362_v29 = vpop.f32.mrb[3].mxu0 }
 0x1a5   : > { %v2662_v30 = vpop.f32.mrb[0].mxu1 }
 0x1a6   : > { %v3570_v31 = vadd.f32 %v2698_v26, %v2662_v30  ;;  %v1137_v32 = vpop.f32.mrb[1].mxu1 }
 0x1a7   : > { %v3572_v33 = vadd.f32 %v1359_v27, %v1137_v32  ;;  %v2663_v15 = vpop.f32.mrb[2].mxu1 }
 0x1a8   : > { %v1488_v34 = vmax.f32 %v3570_v31, -60.0  ;;  %v3575_v35 = vadd.f32 %v2699_v28, %v2663_v15  ;;  %v1140_v36 = vpop.f32.mrb[3].mxu1 }
 0x1a9   : > { %v1486_v17 = vmax.f32 %v3572_v33, -60.0  ;;  %v3578_v37 = vadd.f32 %v1362_v29, %v1140_v36 }
 0x1aa   : > { %v1520_v38 = vsub.f32 0.0, %v1488_v34  ;;  %v1489_v39 = vmax.f32 %v3575_v35, -60.0 }
 0x1ab   : > { %v1518_v40 = vsub.f32 0.0, %v1486_v17  ;;  %v1487_v41 = vmax.f32 %v3578_v37, -60.0 }
 0x1ac   : > { %v1554_v42 = vmul.f32 1.442695, %v1520_v38  ;;  %v1521_v43 = vsub.f32 0.0, %v1489_v39 }
 0x1ad   : > { %v1550_v44 = vmul.f32 1.442695, %v1518_v40  ;;  %v1519_v45 = vsub.f32 0.0, %v1487_v41 }
 0x1ae   : > { %2828 = vpow2.f32 %v1554_v42  ;;  %v1556_v46 = vmul.f32 1.442695, %v1521_v43 }
 0x1af   : > { %2830 = vpow2.f32 %v1550_v44  ;;  %v1552_v47 = vmul.f32 1.442695, %v1519_v45  ;;  %v2702_v48 = vpop.f32.mrb[4].mxu0 }
 0x1b0   : > { %2832 = vpow2.f32 %v1556_v46  ;;  %v1375_v49 = vpop.f32.mrb[5].mxu0 }
 0x1b1   : > { %2834 = vpow2.f32 %v1552_v47  ;;  %v2703_v50 = vpop.f32.mrb[6].mxu0 }
 0x1b2   : > { %v1378_v51 = vpop.f32.mrb[7].mxu0 }
 0x1b5   : > { %v2666_v52 = vpop.f32.mrb[4].mxu1 }
 0x1b6   : > { %v3582_v53 = vadd.f32 %v2702_v48, %v2666_v52  ;;  %v1153_v54 = vpop.f32.mrb[5].mxu1 }
 0x1b7   : > { %v3584_v55 = vadd.f32 %v1375_v49, %v1153_v54  ;;  %v2667_v56 = vpop.f32.mrb[6].mxu1 }
 0x1b8   : > { %v2829_v57 = vpop.eup %2828  ;;  %v1492_v58 = vmax.f32 %v3582_v53, -60.0  ;;  %v3587_v59 = vadd.f32 %v2703_v50, %v2667_v56  ;;  %v1156_v60 = vpop.f32.mrb[7].mxu1 }
 0x1b9   : > { %v2831_v61 = vpop.eup %2830  ;;  %v1616_v62 = vadd.f32 1.0, %v2829_v57  ;;  %v1490_v63 = vmax.f32 %v3584_v55, -60.0  ;;  %v3590_v0 = vadd.f32 %v1378_v51, %v1156_v60 }
 0x1ba   : > { %v2833_v1 = vpop.eup %2832  ;;  %v1614_v2 = vadd.f32 1.0, %v2831_v61  ;;  %v1524_v3 = vsub.f32 0.0, %v1492_v58  ;;  %v1493_v4 = vmax.f32 %v3587_v59, -60.0 }
 0x1bb   : > { %v2835_v5 = vpop.eup %2834  ;;  %2836 = vrcp.f32 %v1616_v62  ;;  %v1617_v6 = vadd.f32 1.0, %v2833_v1  ;;  %v1522_v9 = vsub.f32 0.0, %v1490_v63  ;;  %v1491_v10 = vmax.f32 %v3590_v0, -60.0 }
 0x1bc   : > { %2838 = vrcp.f32 %v1614_v2  ;;  %v1615_v12 = vadd.f32 1.0, %v2835_v5  ;;  %v1562_v13 = vmul.f32 1.442695, %v1524_v3  ;;  %v1525_v14 = vsub.f32 0.0, %v1493_v4  ;;  %v3613_v3 = vld [vmem:[%s4146_s7] ss:$0 sm:$0xff] }
 0x1bd   : > { %2840 = vrcp.f32 %v1617_v6  ;;  %v1558_v16 = vmul.f32 1.442695, %v1522_v9  ;;  %v1523_v18 = vsub.f32 0.0, %v1491_v10 }
 0x1be   : > { %2842 = vrcp.f32 %v1615_v12  ;;  %v1564_v19 = vmul.f32 1.442695, %v1525_v14 }
 0x1bf   : > { %2844 = vpow2.f32 %v1562_v13  ;;  %v1560_v20 = vmul.f32 1.442695, %v1523_v18  ;;  %v2706_v21 = vpop.f32.mrb[8].mxu0 }
 0x1c0   : > { %2846 = vpow2.f32 %v1558_v16  ;;  %v1391_v8 = vpop.f32.mrb[9].mxu0 }
 0x1c1   : > { %2848 = vpow2.f32 %v1564_v19  ;;  %v2707_v22 = vpop.f32.mrb[10].mxu0 }
 0x1c2   : > { %2850 = vpow2.f32 %v1560_v20  ;;  %v1394_v23 = vpop.f32.mrb[11].mxu0 }
 0x1c5   : > { %v2837_v24 = vpop.eup %2836  ;;  %v2670_v25 = vpop.f32.mrb[8].mxu1 }
 0x1c6   : > { %v2839_v26 = vpop.eup %2838  ;;  %v1680_v27 = vmul.f32 %v2837_v24, %v1616_v62  ;;  %v3594_v28 = vadd.f32 %v2706_v21, %v2670_v25  ;;  %v1169_v29 = vpop.f32.mrb[9].mxu1 }
 0x1c7   : > { %v2841_v30 = vpop.eup %2840  ;;  %v1678_v32 = vmul.f32 %v2839_v26, %v1614_v2  ;;  %v3596_v15 = vadd.f32 %v1391_v8, %v1169_v29  ;;  %v2671_v34 = vpop.f32.mrb[10].mxu1 }
 0x1c8   : > { %v2843_v36 = vpop.eup %2842  ;;  %v1712_v17 = vsub.f32 2.0, %v1680_v27  ;;  %v1681_v38 = vmul.f32 %v2841_v30, %v1617_v6  ;;  %v1496_v39 = vmax.f32 %v3594_v28, -60.0  ;;  %v3599_v40 = vadd.f32 %v2707_v22, %v2671_v34  ;;  %v1172_v41 = vpop.f32.mrb[11].mxu1 }
 0x1c9   : > { %v2845_v42 = vpop.eup %2844  ;;  %v1710_v43 = vsub.f32 2.0, %v1678_v32  ;;  %v1679_v44 = vmul.f32 %v2843_v36, %v1615_v12  ;;  %v1494_v45 = vmax.f32 %v3596_v15, -60.0  ;;  %v3602_v46 = vadd.f32 %v1394_v23, %v1172_v41 }
 0x1ca   : > { %v2847_v47 = vpop.eup %2846  ;;  %v1744_v48 = vmul.f32 %v2837_v24, %v1712_v17  ;;  %v1713_v49 = vsub.f32 2.0, %v1681_v38  ;;  %v1620_v50 = vadd.f32 1.0, %v2845_v42  ;;  %v1528_v51 = vsub.f32 0.0, %v1496_v39 }
 0x1cb   : > { %v2849_v52 = vpop.eup %2848  ;;  %v1742_v54 = vmul.f32 %v2839_v26, %v1710_v43  ;;  %v1711_v56 = vsub.f32 2.0, %v1679_v44  ;;  %v1618_v57 = vadd.f32 1.0, %v2847_v47  ;;  %v1526_v58 = vsub.f32 0.0, %v1494_v45 }
 0x1cc   : > { %v2851_v60 = vpop.eup %2850  ;;  %v3605_v61 = vmul.f32 %v1744_v48, %v3570_v31  ;;  %v1745_v62 = vmul.f32 %v2841_v30, %v1713_v49  ;;  %2852 = vrcp.f32 %v1620_v50  ;;  %v1621_v63 = vadd.f32 1.0, %v2849_v52 }
 0x1cd   : > { %v3608_v1 = vmul.f32 %v1742_v54, %v3572_v33  ;;  %2854 = vrcp.f32 %v1618_v57  ;;  %v1619_v2 = vadd.f32 1.0, %v2851_v60  ;;  %v1570_v4 = vmul.f32 1.442695, %v1528_v51 }
 0x1ce   : > { %2856 = vrcp.f32 %v1621_v63  ;;  %v1566_v5 = vmul.f32 1.442695, %v1526_v58  ;;  %v1743_v6 = vmul.f32 %v2843_v36, %v1711_v56  ;;  %v1497_v31 = vmax.f32 %v3599_v40, -60.0 }
 0x1cf   : > { %2858 = vrcp.f32 %v1619_v2  ;;  %v1495_v9 = vmax.f32 %v3602_v46, -60.0  ;;  %v2710_v10 = vpop.f32.mrb[12].mxu0  ;;  %v3618_v33 = vmul.f32 %v1745_v62, %v3575_v35  ;;  %v1815_v12 = vmul.f32 %v3613_v3, %v3605_v61 }
 0x1d0   : > { %2860 = vpow2.f32 %v1570_v4  ;;  %v1407_v13 = vpop.f32.mrb[13].mxu0  ;;  %v1813_v14 = vmul.f32 %v3613_v3, %v3608_v1  ;;  %v1529_v16 = vsub.f32 0.0, %v1497_v31  ;;  %v3625_v35 = vmul.f32 %v1743_v6, %v3578_v37 }
 0x1d1   : > { %2862 = vpow2.f32 %v1566_v5  ;;  %v1527_v18 = vsub.f32 0.0, %v1495_v9  ;;  %v2711_v19 = vpop.f32.mrb[14].mxu0  ;;  %1849 = vadd.xlane.f32.xlu1 %v1815_v12  ;;  %v1816_v22 = vmul.f32 %v3613_v3, %v3618_v33 }
 0x1d2   : > { %1845 = vadd.xlane.f32.xlu0 %v1813_v14  ;;  %v1410_v20 = vpop.f32.mrb[15].mxu0  ;;  %v1572_v21 = vmul.f32 1.442695, %v1529_v16  ;;  %v1814_v38 = vmul.f32 %v3613_v3, %v3625_v35 }
 0x1d3   : > { %v1568_v8 = vmul.f32 1.442695, %v1527_v18 }
 0x1d4   : > { %2864 = vpow2.f32 %v1572_v21 }
 0x1d5   : > { %v2674_v23 = vpop.f32.mrb[12].mxu1  ;;  %2866 = vpow2.f32 %v1568_v8 }
 0x1d6   : > { %v2853_v24 = vpop.eup %2852  ;;  %v3629_v25 = vadd.f32 %v2710_v10, %v2674_v23  ;;  %1851 = vadd.xlane.f32.xlu0 %v1816_v22  ;;  %v1185_v26 = vpop.f32.mrb[13].mxu1 }
 0x1d7   : > { %v2855_v27 = vpop.eup %2854  ;;  %v1684_v29 = vmul.f32 %v2853_v24, %v1620_v50  ;;  %v3631_v30 = vadd.f32 %v1407_v13, %v1185_v26  ;;  %v2675_v32 = vpop.f32.mrb[14].mxu1 }
 0x1d8   : > { %v2857_v34 = vpop.eup %2856  ;;  %v1682_v36 = vmul.f32 %v2855_v27, %v1618_v57  ;;  %v3633_v37 = vadd.f32 %v2711_v19, %v2675_v32  ;;  %v1188_v17 = vpop.f32.mrb[15].mxu1 }
 0x1d9   : > { %v2859_v39 = vpop.eup %2858  ;;  %v1716_v41 = vsub.f32 2.0, %v1684_v29  ;;  %v1685_v42 = vmul.f32 %v2857_v34, %v1621_v63  ;;  %v3637_v43 = vadd.f32 %v1410_v20, %v1188_v17 }
 0x1da   : > { %v2861_v44 = vpop.eup %2860  ;;  %v1714_v45 = vsub.f32 2.0, %v1682_v36  ;;  %v1683_v47 = vmul.f32 %v2859_v39, %v1619_v2  ;;  %1847 = vadd.xlane.f32.xlu0 %v1814_v38 }
 0x1db   : > { %v2863_v48 = vpop.eup %2862  ;;  %v1748_v49 = vmul.f32 %v2853_v24, %v1716_v41  ;;  %v1717_v50 = vsub.f32 2.0, %v1685_v42  ;;  %v1624_v51 = vadd.f32 1.0, %v2861_v44 }
 0x1dc   : > { %v1746_v52 = vmul.f32 %v2855_v27, %v1714_v45  ;;  %v1715_v54 = vsub.f32 2.0, %v1683_v47  ;;  %v1622_v56 = vadd.f32 1.0, %v2863_v48 }
 0x1dd   : > { %v3640_v57 = vmul.f32 %v1748_v49, %v3582_v53  ;;  %v1749_v58 = vmul.f32 %v2857_v34, %v1717_v50  ;;  %2868 = vrcp.f32 %v1624_v51 }
 0x1de   : > { %v1747_v60 = vmul.f32 %v2859_v39, %v1715_v54  ;;  %2870 = vrcp.f32 %v1622_v56  ;;  %v2865_v62 = vpop.eup %2864  ;;  %v3643_v63 = vmul.f32 %v1746_v52, %v3584_v55 }
 0x1df   : > { %v3646_v2 = vmul.f32 %v1749_v58, %v3587_v59  ;;  %v2714_v4 = vpop.f32.mrb[16].mxu0  ;;  %v1819_v5 = vmul.f32 %v3613_v3, %v3640_v57  ;;  %v2867_v6 = vpop.eup %2866  ;;  %v1625_v31 = vadd.f32 1.0, %v2865_v62 }
 0x1e0   : > { %v1423_v9 = vpop.f32.mrb[17].mxu0  ;;  %v3651_v53 = vmul.f32 %v1747_v60, %v3590_v0  ;;  %v1623_v10 = vadd.f32 1.0, %v2867_v6  ;;  %v1817_v59 = vmul.f32 %v3613_v3, %v3643_v63 }
 0x1e1   : > { %1857 = vadd.xlane.f32.xlu1 %v1819_v5  ;;  %v2715_v12 = vpop.f32.mrb[18].mxu0  ;;  %v1820_v55 = vmul.f32 %v3613_v3, %v3646_v2  ;;  %2872 = vrcp.f32 %v1625_v31 }
 0x1e2   : > { %v1426_v13 = vpop.f32.mrb[19].mxu0  ;;  %2874 = vrcp.f32 %v1623_v10  ;;  %v1818_v16 = vmul.f32 %v3613_v3, %v3651_v53 }
 0x1e3   : > { %1859 = vadd.xlane.f32.xlu0 %v1820_v55 }
 0x1e5   : > { %1853 = vadd.xlane.f32.xlu1 %v1817_v59  ;;  %v2678_v14 = vpop.f32.mrb[16].mxu1 }
 0x1e6   : > { %v3659_v0 = vadd.f32 %v2714_v4, %v2678_v14  ;;  %v1201_v18 = vpop.f32.mrb[17].mxu1 }
 0x1e7   : > { %v2869_v19 = vpop.eup %2868  ;;  %v3661_v20 = vadd.f32 %v1423_v9, %v1201_v18  ;;  %1855 = vadd.xlane.f32.xlu0 %v1818_v16  ;;  %v2679_v21 = vpop.f32.mrb[18].mxu1 }
 0x1e8   : > { %v2871_v8 = vpop.eup %2870  ;;  %v1688_v22 = vmul.f32 %v2869_v19, %v1624_v51  ;;  %v1504_v23 = vmax.f32 %v3659_v0, -60.0  ;;  %v3664_v24 = vadd.f32 %v2715_v12, %v2679_v21  ;;  %v1204_v26 = vpop.f32.mrb[19].mxu1 }
 0x1e9   : > { %v1686_v27 = vmul.f32 %v2871_v8, %v1622_v56  ;;  %v1502_v29 = vmax.f32 %v3661_v20, -60.0  ;;  %v3667_v32 = vadd.f32 %v1426_v13, %v1204_v26 }
 0x1ea   : > { %v1720_v34 = vsub.f32 2.0, %v1688_v22  ;;  %v1536_v36 = vsub.f32 0.0, %v1504_v23  ;;  %v1505_v17 = vmax.f32 %v3664_v24, -60.0 }
 0x1eb   : > { %v1718_v38 = vsub.f32 2.0, %v1686_v27  ;;  %v1534_v39 = vsub.f32 0.0, %v1502_v29  ;;  %v2873_v41 = vpop.eup %2872  ;;  %v1503_v47 = vmax.f32 %v3667_v32, -60.0 }
 0x1ec   : > { %v1752_v42 = vmul.f32 %v2869_v19, %v1720_v34  ;;  %v1586_v44 = vmul.f32 1.442695, %v1536_v36  ;;  %v1537_v45 = vsub.f32 0.0, %v1505_v17  ;;  %v2875_v48 = vpop.eup %2874  ;;  %v1689_v50 = vmul.f32 %v2873_v41, %v1625_v31 }
 0x1ed   : > { %v1750_v49 = vmul.f32 %v2871_v8, %v1718_v38  ;;  %v1582_v51 = vmul.f32 1.442695, %v1534_v39  ;;  %v1687_v54 = vmul.f32 %v2875_v48, %v1623_v10  ;;  %v1535_v4 = vsub.f32 0.0, %v1503_v47 }
 0x1ee   : > { %v3672_v52 = vmul.f32 %v1752_v42, %v3594_v28  ;;  %2876 = vpow2.f32 %v1586_v44  ;;  %v1588_v56 = vmul.f32 1.442695, %v1537_v45  ;;  %v1721_v58 = vsub.f32 2.0, %v1689_v50 }
 0x1ef   : > { %2878 = vpow2.f32 %v1582_v51  ;;  %v2718_v60 = vpop.f32.mrb[20].mxu0  ;;  %v1719_v62 = vsub.f32 2.0, %v1687_v54  ;;  %v3675_v6 = vmul.f32 %v1750_v49, %v3596_v15  ;;  %v1584_v55 = vmul.f32 1.442695, %v1535_v4 }
 0x1f0   : > { %4171 = vst [vmem:[#allocation13_spill] sm:$0xff] %v3672_v52  ;;  %2880 = vpow2.f32 %v1588_v56  ;;  %v1439_v5 = vpop.f32.mrb[21].mxu0  ;;  %v1753_v9 = vmul.f32 %v2873_v41, %v1721_v58  ;;  %v1823_v31 = vmul.f32 %v3613_v3, %v3672_v52  ;;  %v1498_v38 = vmax.f32 %v3631_v30, -60.0 }
 0x1f1   : > { %v2719_v12 = vpop.f32.mrb[22].mxu0  ;;  %v1751_v28 = vmul.f32 %v2875_v48, %v1719_v62  ;;  %2882 = vpow2.f32 %v1584_v55  ;;  %v1821_v14 = vmul.f32 %v3613_v3, %v3675_v6  ;;  %v1499_v44 = vmax.f32 %v3637_v43, -60.0 }
 0x1f2   : > { %v1442_v10 = vpop.f32.mrb[23].mxu0  ;;  %v3680_v13 = vmul.f32 %v1753_v9, %v3599_v40  ;;  %1865 = vadd.xlane.f32.xlu1 %v1823_v31  ;;  %v1530_v51 = vsub.f32 0.0, %v1498_v38 }
 0x1f3   : > { %v3683_v59 = vmul.f32 %v1751_v28, %v3602_v46  ;;  %v1531_v56 = vsub.f32 0.0, %v1499_v44 }
 0x1f4   : > { %v1824_v15 = vmul.f32 %v3613_v3, %v3680_v13  ;;  %v1574_v28 = vmul.f32 1.442695, %v1530_v51 }
 0x1f5   : > { %v2682_v16 = vpop.f32.mrb[20].mxu1  ;;  %v1822_v34 = vmul.f32 %v3613_v3, %v3683_v59 }
 0x1f6   : > { %v3689_v18 = vadd.f32 %v2718_v60, %v2682_v16  ;;  %v1217_v19 = vpop.f32.mrb[21].mxu1  ;;  %1867 = vadd.xlane.f32.xlu0 %v1824_v15  ;;  %1861 = vadd.xlane.f32.xlu1 %v1821_v14 }
 0x1f7   : > { %v3691_v21 = vadd.f32 %v1439_v5, %v1217_v19  ;;  %v2683_v40 = vpop.f32.mrb[22].mxu1 }
 0x1f8   : > { %v2877_v8 = vpop.eup %2876  ;;  %v1508_v22 = vmax.f32 %v3689_v18, -60.0  ;;  %v3694_v46 = vadd.f32 %v2719_v12, %v2683_v40  ;;  %v1220_v23 = vpop.f32.mrb[23].mxu1  ;;  %v1500_v12 = vmax.f32 %v3629_v25, -60.0 }
 0x1f9   : > { %v2879_v26 = vpop.eup %2878  ;;  %v1632_v27 = vadd.f32 1.0, %v2877_v8  ;;  %v1506_v29 = vmax.f32 %v3691_v21, -60.0  ;;  %v3699_v36 = vadd.f32 %v1442_v10, %v1220_v23  ;;  %v1576_v10 = vmul.f32 1.442695, %v1531_v56 }
 0x1fa   : > { %v2881_v17 = vpop.eup %2880  ;;  %v1630_v39 = vadd.f32 1.0, %v2879_v26  ;;  %v1540_v41 = vsub.f32 0.0, %v1508_v22  ;;  %v1509_v42 = vmax.f32 %v3694_v46, -60.0  ;;  %1863 = vadd.xlane.f32.xlu0 %v1822_v34  ;;  %v1532_v40 = vsub.f32 0.0, %v1500_v12 }
 0x1fb   : > { %2884 = vrcp.f32 %v1632_v27  ;;  %v1633_v45 = vadd.f32 1.0, %v2881_v17  ;;  %v1538_v47 = vsub.f32 0.0, %v1506_v29  ;;  %v2883_v50 = vpop.eup %2882  ;;  %v1507_v60 = vmax.f32 %v3699_v36, -60.0 }
 0x1fc   : > { %2886 = vrcp.f32 %v1630_v39  ;;  %v1594_v48 = vmul.f32 1.442695, %v1540_v41  ;;  %v1541_v54 = vsub.f32 0.0, %v1509_v42  ;;  %v1631_v58 = vadd.f32 1.0, %v2883_v50 }
 0x1fd   : > { %2888 = vrcp.f32 %v1633_v45  ;;  %v1590_v49 = vmul.f32 1.442695, %v1538_v47  ;;  %v1539_v9 = vsub.f32 0.0, %v1507_v60  ;;  %v1501_v29 = vmax.f32 %v3633_v37, -60.0 }
 0x1fe   : > { %2890 = vpow2.f32 %v1594_v48  ;;  %v1596_v4 = vmul.f32 1.442695, %v1541_v54 }
 0x1ff   : > { %2892 = vpow2.f32 %v1590_v49  ;;  %v2722_v62 = vpop.f32.mrb[24].mxu0  ;;  %v1592_v15 = vmul.f32 1.442695, %v1539_v9 }
 0x200   : > { %v1455_v5 = vpop.f32.mrb[25].mxu0  ;;  %2894 = vrcp.f32 %v1631_v58 }
 0x201   : > { %v2723_v31 = vpop.f32.mrb[26].mxu0  ;;  %2896 = vpow2.f32 %v1596_v4 }
 0x202   : > { %v1458_v55 = vpop.f32.mrb[27].mxu0  ;;  %2898 = vpow2.f32 %v1592_v15 }
 0x203   : > { %2900 = vpow2.f32 %v1574_v28 }
 0x204   : > { %2902 = vpow2.f32 %v1576_v10 }
 0x205   : > { %v2885_v14 = vpop.eup %2884  ;;  %v2686_v16 = vpop.f32.mrb[24].mxu1 }
 0x206   : > { %v2887_v19 = vpop.eup %2886  ;;  %v1696_v8 = vmul.f32 %v2885_v14, %v1632_v27  ;;  %v3706_v22 = vadd.f32 %v2722_v62, %v2686_v16  ;;  %v1233_v23 = vpop.f32.mrb[25].mxu1 }
 0x207   : > { %v2889_v26 = vpop.eup %2888  ;;  %v1694_v34 = vmul.f32 %v2887_v19, %v1630_v39  ;;  %v3709_v17 = vadd.f32 %v1455_v5, %v1233_v23  ;;  %v2687_v38 = vpop.f32.mrb[26].mxu1  ;;  %v1533_v23 = vsub.f32 0.0, %v1501_v29 }
 0x208   : > { %v2891_v41 = vpop.eup %2890  ;;  %v1728_v42 = vsub.f32 2.0, %v1696_v8  ;;  %v1697_v44 = vmul.f32 %v2889_v26, %v1633_v45  ;;  %v1512_v47 = vmax.f32 %v3706_v22, -60.0  ;;  %v3712_v48 = vadd.f32 %v2723_v31, %v2687_v38  ;;  %v1236_v49 = vpop.f32.mrb[27].mxu1 }
 0x209   : > { %v2893_v27 = vpop.eup %2892  ;;  %v1726_v50 = vsub.f32 2.0, %v1694_v34  ;;  %v1636_v51 = vadd.f32 1.0, %v2891_v41  ;;  %v1510_v54 = vmax.f32 %v3709_v17, -60.0  ;;  %v3715_v56 = vadd.f32 %v1458_v55, %v1236_v49 }
 0x20a   : > { %v1760_v60 = vmul.f32 %v2885_v14, %v1728_v42  ;;  %v1729_v39 = vsub.f32 2.0, %v1697_v44  ;;  %v1634_v62 = vadd.f32 1.0, %v2893_v27  ;;  %v1544_v4 = vsub.f32 0.0, %v1512_v47  ;;  %v2895_v5 = vpop.eup %2894 }
 0x20b   : > { %v1758_v9 = vmul.f32 %v2887_v19, %v1726_v50  ;;  %2904 = vrcp.f32 %v1636_v51  ;;  %v1542_v45 = vsub.f32 0.0, %v1510_v54  ;;  %v1513_v12 = vmax.f32 %v3712_v48, -60.0  ;;  %v2897_v31 = vpop.eup %2896 }
 0x20c   : > { %v3719_v28 = vmul.f32 %v1760_v60, %v3659_v0  ;;  %v1761_v10 = vmul.f32 %v2889_v26, %v1729_v39  ;;  %v1695_v15 = vmul.f32 %v2895_v5, %v1631_v58  ;;  %2906 = vrcp.f32 %v1634_v62  ;;  %v2899_v41 = vpop.eup %2898 }
 0x20d   : > { %v3722_v55 = vmul.f32 %v1758_v9, %v3661_v20  ;;  %v1637_v14 = vadd.f32 1.0, %v2897_v31  ;;  %v1602_v16 = vmul.f32 1.442695, %v1544_v4  ;;  %v1598_v8 = vmul.f32 1.442695, %v1542_v45  ;;  %v2901_v26 = vpop.eup %2900 }
 0x20e   : > { %v1727_v34 = vsub.f32 2.0, %v1695_v15  ;;  %v1545_v19 = vsub.f32 0.0, %v1513_v12  ;;  %v1511_v38 = vmax.f32 %v3715_v56, -60.0  ;;  %v3726_v42 = vmul.f32 %v1761_v10, %v3664_v24  ;;  %v2903_v27 = vpop.eup %2902 }
 0x20f   : > { %2908 = vrcp.f32 %v1637_v14  ;;  %v2726_v0 = vpop.f32.mrb[28].mxu0  ;;  %v1831_v58 = vmul.f32 %v3613_v3, %v3719_v28  ;;  %v1829_v20 = vmul.f32 %v3613_v3, %v3722_v55  ;;  %v1635_v47 = vadd.f32 1.0, %v2899_v41 }
 0x210   : > { %v1759_v44 = vmul.f32 %v2895_v5, %v1727_v34  ;;  %2910 = vpow2.f32 %v1602_v16  ;;  %v1604_v29 = vmul.f32 1.442695, %v1545_v19  ;;  %v1471_v49 = vpop.f32.mrb[29].mxu0  ;;  %v1543_v50 = vsub.f32 0.0, %v1511_v38 }
 0x211   : > { %2912 = vpow2.f32 %v1598_v8  ;;  %1881 = vadd.xlane.f32.xlu1 %v1831_v58  ;;  %v2727_v24 = vpop.f32.mrb[30].mxu0  ;;  %1877 = vadd.xlane.f32.xlu0 %v1829_v20  ;;  %v1578_v54 = vmul.f32 1.442695, %v1532_v40  ;;  %v1580_v4 = vmul.f32 1.442695, %v1533_v23  ;;  %v1832_v5 = vmul.f32 %v3613_v3, %v3726_v42 }
 0x212   : > { %v3733_v60 = vmul.f32 %v1759_v44, %v3667_v32  ;;  %2914 = vrcp.f32 %v1635_v47  ;;  %v1474_v39 = vpop.f32.mrb[31].mxu0  ;;  %v1600_v9 = vmul.f32 1.442695, %v1543_v50  ;;  %v3737_v45 = vadd.f32 1.0, %v2901_v26 }
 0x213   : > { %2916 = vpow2.f32 %v1604_v29  ;;  %v3741_v10 = vadd.f32 1.0, %v2903_v27 }
 0x214   : > { %v1830_v12 = vmul.f32 %v3613_v3, %v3733_v60  ;;  %2918 = vpow2.f32 %v1600_v9 }
 0x215   : > { %v2905_v31 = vpop.eup %2904  ;;  %v2690_v40 = vpop.f32.mrb[28].mxu1  ;;  %1883 = vadd.xlane.f32.xlu0 %v1832_v5  ;;  %2920 = vpow2.f32 %v1578_v54 }
 0x216   : > { %v2907_v32 = vpop.eup %2906  ;;  %v1700_v15 = vmul.f32 %v2905_v31, %v1636_v51  ;;  %1879 = vadd.xlane.f32.xlu1 %v1830_v12  ;;  %v3743_v16 = vadd.f32 %v2726_v0, %v2690_v40  ;;  %v1249_v8 = vpop.f32.mrb[29].mxu1  ;;  %2922 = vpow2.f32 %v1580_v4 }
 0x217   : > { %v1698_v23 = vmul.f32 %v2907_v32, %v1634_v62  ;;  %v3745_v34 = vadd.f32 %v1471_v49, %v1249_v8  ;;  %v2691_v19 = vpop.f32.mrb[30].mxu1  ;;  %2924 = vrcp.f32 %v3737_v45 }
 0x218   : > { %v1732_v38 = vsub.f32 2.0, %v1700_v15  ;;  %v1516_v41 = vmax.f32 %v3743_v16, -60.0  ;;  %v3749_v58 = vadd.f32 %v2727_v24, %v2691_v19  ;;  %v1252_v20 = vpop.f32.mrb[31].mxu1  ;;  %2926 = vrcp.f32 %v3741_v10 }
 0x219   : > { %v2909_v26 = vpop.eup %2908  ;;  %v1730_v51 = vsub.f32 2.0, %v1698_v23  ;;  %v1514_v0 = vmax.f32 %v3745_v34, -60.0  ;;  %v3753_v44 = vadd.f32 %v1474_v39, %v1252_v20 }
 0x21a   : > { %v2911_v62 = vpop.eup %2910  ;;  %v1764_v29 = vmul.f32 %v2905_v31, %v1732_v38  ;;  %v1701_v49 = vmul.f32 %v2909_v26, %v1637_v14  ;;  %v1548_v27 = vsub.f32 0.0, %v1516_v41  ;;  %v1517_v50 = vmax.f32 %v3749_v58, -60.0 }
 0x21b   : > { %v2913_v54 = vpop.eup %2912  ;;  %v1762_v4 = vmul.f32 %v2907_v32, %v1730_v51  ;;  %v1640_v9 = vadd.f32 1.0, %v2911_v62  ;;  %v1546_v24 = vsub.f32 0.0, %v1514_v0  ;;  %v1515_v5 = vmax.f32 %v3753_v44, -60.0 }
 0x21c   : > { %v2915_v12 = vpop.eup %2914  ;;  %v3758_v40 = vmul.f32 %v1764_v29, %v3689_v18  ;;  %v1733_v15 = vsub.f32 2.0, %v1701_v49  ;;  %v1638_v8 = vadd.f32 1.0, %v2913_v54  ;;  %v1610_v39 = vmul.f32 1.442695, %v1548_v27 }
 0x21d   : > { %v2917_v23 = vpop.eup %2916  ;;  %v3761_v31 = vmul.f32 %v1762_v4, %v3691_v21  ;;  %v1699_v14 = vmul.f32 %v2915_v12, %v1635_v47  ;;  %2928 = vrcp.f32 %v1640_v9  ;;  %v1606_v19 = vmul.f32 1.442695, %v1546_v24 }
 0x21e   : > { %v1765_v38 = vmul.f32 %v2909_v26, %v1733_v15  ;;  %2930 = vrcp.f32 %v1638_v8  ;;  %v1641_v32 = vadd.f32 1.0, %v2917_v23  ;;  %v1549_v41 = vsub.f32 0.0, %v1517_v50  ;;  %v2919_v20 = vpop.eup %2918 }
 0x21f   : > { %v1731_v51 = vsub.f32 2.0, %v1699_v14  ;;  %2932 = vpow2.f32 %v1610_v39  ;;  %v1547_v0 = vsub.f32 0.0, %v1515_v5  ;;  %v1835_v18 = vmul.f32 %v3613_v3, %v3758_v40  ;;  %v2921_v62 = vpop.eup %2920 }
 0x220   : > { %v3766_v29 = vmul.f32 %v1765_v38, %v3694_v46  ;;  %2934 = vrcp.f32 %v1641_v32  ;;  %v1639_v21 = vadd.f32 1.0, %v2919_v20  ;;  %v1612_v47 = vmul.f32 1.442695, %v1549_v41  ;;  %v2923_v49 = vpop.eup %2922 }
 0x221   : > { %v1763_v27 = vmul.f32 %v2915_v12, %v1731_v51  ;;  %2936 = vpow2.f32 %v1606_v19  ;;  %v1608_v26 = vmul.f32 1.442695, %v1547_v0  ;;  %1889 = vadd.xlane.f32.xlu1 %v1835_v18  ;;  %v2925_v50 = vpop.eup %2924  ;;  %v1833_v46 = vmul.f32 %v3613_v3, %v3761_v31 }
 0x222   : > { %2938 = vrcp.f32 %v1639_v21  ;;  %v1836_v54 = vmul.f32 %v3613_v3, %v3766_v29  ;;  %v2927_v4 = vpop.eup %2926  ;;  %v1628_v15 = vadd.f32 1.0, %v2921_v62  ;;  %v1690_v23 = vmul.f32 %v2925_v50, %v3737_v45 }
 0x223   : > { %v3771_v24 = vmul.f32 %v1763_v27, %v3699_v36  ;;  %2940 = vpow2.f32 %v1612_v47  ;;  %v1629_v36 = vadd.f32 1.0, %v2923_v49  ;;  %v1691_v18 = vmul.f32 %v2927_v4, %v3741_v10 }
 0x224   : > { %2942 = vpow2.f32 %v1608_v26  ;;  %1891 = vadd.xlane.f32.xlu0 %v1836_v54  ;;  %v1722_v54 = vsub.f32 2.0, %v1690_v23 }
 0x225   : > { %1885 = vadd.xlane.f32.xlu1 %v1833_v46  ;;  %v1834_v5 = vmul.f32 %v3613_v3, %v3771_v24  ;;  %2944 = vrcp.f32 %v1628_v15  ;;  %v1723_v7 = vsub.f32 2.0, %v1691_v18 }
 0x226   : > { %v1754_v52 = vmul.f32 %v2925_v50, %v1722_v54 }
 0x227   : > { %v2929_v12 = vpop.eup %2928 }
 0x228   : > { %v2931_v39 = vpop.eup %2930  ;;  %v1704_v14 = vmul.f32 %v2929_v12, %v1640_v9  ;;  %1887 = vadd.xlane.f32.xlu0 %v1834_v5 }
 0x229   : > { %v2933_v19 = vpop.eup %2932  ;;  %v1702_v38 = vmul.f32 %v2931_v39, %v1638_v8 }
 0x22a   : > { %v2935_v41 = vpop.eup %2934  ;;  %v1736_v20 = vsub.f32 2.0, %v1704_v14  ;;  %v1644_v51 = vadd.f32 1.0, %v2933_v19 }
 0x22b   : > { %v2937_v0 = vpop.eup %2936  ;;  %v1734_v47 = vsub.f32 2.0, %v1702_v38  ;;  %v1705_v27 = vmul.f32 %v2935_v41, %v1641_v32 }
 0x22c   : > { %v2939_v26 = vpop.eup %2938  ;;  %v1768_v62 = vmul.f32 %v2929_v12, %v1736_v20  ;;  %2946 = vrcp.f32 %v1644_v51  ;;  %v1642_v46 = vadd.f32 1.0, %v2937_v0 }
 0x22d   : > { %v2941_v45 = vpop.eup %2940  ;;  %2948 = vrcp.f32 %v1629_v36  ;;  %v1766_v9 = vmul.f32 %v2931_v39, %v1734_v47  ;;  %v1737_v5 = vsub.f32 2.0, %v1705_v27  ;;  %v1703_v49 = vmul.f32 %v2939_v26, %v1639_v21 }
 0x22e   : > { %v2943_v8 = vpop.eup %2942  ;;  %v3780_v14 = vmul.f32 %v1768_v62, %v3706_v22  ;;  %2950 = vrcp.f32 %v1642_v46  ;;  %v1645_v19 = vadd.f32 1.0, %v2941_v45  ;;  %v1755_v22 = vmul.f32 %v2927_v4, %v1723_v7 }
 0x22f   : > { %v1769_v10 = vmul.f32 %v2935_v41, %v1737_v5  ;;  %v1735_v38 = vsub.f32 2.0, %v1703_v49  ;;  %v1643_v32 = vadd.f32 1.0, %v2943_v8  ;;  %v3783_v12 = vmul.f32 %v1766_v9, %v3709_v17  ;;  %v2945_v0 = vpop.eup %2944 }
 0x230   : > { %2952 = vrcp.f32 %v1645_v19  ;;  %v1839_v39 = vmul.f32 %v3613_v3, %v3780_v14  ;;  %v3796_v17 = vmul.f32 %v1754_v52, %v3631_v30  ;;  %v3801_v47 = vmul.f32 %v1755_v22, %v3637_v43 }
 0x231   : > { %v3788_v21 = vmul.f32 %v1769_v10, %v3712_v48  ;;  %v1767_v23 = vmul.f32 %v2939_v26, %v1735_v38  ;;  %2954 = vrcp.f32 %v1643_v32  ;;  %v1837_v41 = vmul.f32 %v3613_v3, %v3783_v12 }
 0x232   : > { %1897 = vadd.xlane.f32.xlu1 %v1839_v39  ;;  %4172 = vst [vmem:[#allocation14_spill] sm:$0xff] %v3796_v17  ;;  %4173 = vst [vmem:[#allocation15_spill] sm:$0xff] %v3801_v47  ;;  %v1825_v30 = vmul.f32 %v3613_v3, %v3796_v17  ;;  %v1692_v52 = vmul.f32 %v2945_v0, %v1628_v15  ;;  %v1826_v43 = vmul.f32 %v3613_v3, %v3801_v47 }
 0x233   : > { %v3791_v20 = vmul.f32 %v1767_v23, %v3715_v56  ;;  %v1840_v50 = vmul.f32 %v3613_v3, %v3788_v21 }
 0x234   : > { %v1724_v49 = vsub.f32 2.0, %v1692_v52 }
 0x235   : > { %1899 = vadd.xlane.f32.xlu0 %v1840_v50  ;;  %v1838_v56 = vmul.f32 %v3613_v3, %v3791_v20 }
 0x236   : > { %v2947_v48 = vpop.eup %2946  ;;  %1893 = vadd.xlane.f32.xlu1 %v1837_v41  ;;  %v1756_v50 = vmul.f32 %v2945_v0, %v1724_v49 }
 0x237   : > { %v2949_v18 = vpop.eup %2948  ;;  %v1708_v7 = vmul.f32 %v2947_v48, %v1644_v51 }
 0x238   : > { %v2951_v4 = vpop.eup %2950  ;;  %v1693_v51 = vmul.f32 %v2949_v18, %v1629_v36 }
 0x239   : > { %v1740_v27 = vsub.f32 2.0, %v1708_v7  ;;  %v1706_v26 = vmul.f32 %v2951_v4, %v1642_v46  ;;  %1895 = vadd.xlane.f32.xlu0 %v1838_v56  ;;  %v3826_v7 = vmul.f32 %v1756_v50, %v3629_v25  ;;  %v2282_v50 = vld [vmem:[%s395_s14] sm:$0x3]  ;;  %s2350_s14 = sld [smem:[%s2762_s10 + %s4214_s18]]  ;;  %s4199_s18 = sand.u32 1, %s3152_s16  }
 0x23a   : > { %v2953_v54 = vpop.eup %2952  ;;  %1869 = vadd.xlane.f32.xlu1 %v1825_v30  ;;  %v1725_v46 = vsub.f32 2.0, %v1693_v51  ;;  %s2343_s20 = scalar_lea.sflag [#allocation6], %s4199_s18 }
 0x23b   : > { %v2955_v62 = vpop.eup %2954  ;;  %v1738_v45 = vsub.f32 2.0, %v1706_v26  ;;  %v1709_v9 = vmul.f32 %v2953_v54, %v1645_v19  ;;  %v1772_v8 = vmul.f32 %v2947_v48, %v1740_v27  ;;  %4178 = vst [vmem:[#allocation20_spill] sm:$0xff] %v3826_v7 }
 0x23c   : > { %v1707_v5 = vmul.f32 %v2955_v62, %v1643_v32  ;;  %v1757_v41 = vmul.f32 %v2949_v18, %v1725_v46 }
 0x23d   : > { %v1770_v10 = vmul.f32 %v2951_v4, %v1738_v45  ;;  %v1741_v38 = vsub.f32 2.0, %v1709_v9  ;;  %1871 = vadd.xlane.f32.xlu0 %v1826_v43  ;;  %v3813_v19 = vmul.f32 %v1772_v8, %v3743_v16  ;;  %v3839_v4 = vstv %s1909_s25 }
 0x23e   : > { %v1739_v39 = vsub.f32 2.0, %v1707_v5  ;;  %v3831_v0 = vmul.f32 %v1757_v41, %v3633_v37 }
 0x23f   : > { %v3810_v15 = vmul.f32 %v1770_v10, %v3745_v34  ;;  %v1773_v23 = vmul.f32 %v2953_v54, %v1741_v38  ;;  %4175 = vst [vmem:[#allocation17_spill] sm:$0xff] %v3813_v19  ;;  %v1843_v16 = vmul.f32 %v3613_v3, %v3813_v19  ;;  %v4180_v38 = vlaneseq  ;;  %s2598_s21 = sshll.u32 %s2350_s14, 7 }
 0x240   : > { %v1771_v22 = vmul.f32 %v2955_v62, %v1739_v39  ;;  %4179 = vst [vmem:[#allocation21_spill] sm:$0xff] %v3831_v0  ;;  %v1828_v25 = vmul.f32 %v3613_v3, %v3831_v0  ;;  %s4094_s8 = scalar_lea.hbm %s4148_s9, %s2598_s21 }
 0x241   : > { %4174 = vst [vmem:[#allocation16_spill] sm:$0xff] %v3810_v15  ;;  %v1841_v36 = vmul.f32 %v3613_v3, %v3810_v15  ;;  %v3821_v48 = vmul.f32 %v1773_v23, %v3749_v58  ;;  %v1827_v58 = vmul.f32 %v3613_v3, %v3826_v7  ;;  %v2280_v39 = vshrl.u32 %v4180_v38, 7 }
 0x242   : > { %v3818_v32 = vmul.f32 %v1771_v22, %v3753_v44 }
 0x243   : > { %1901 = vadd.xlane.f32.xlu1 %v1841_v36  ;;  %4177 = vst [vmem:[#allocation19_spill] sm:$0xff] %v3821_v48  ;;  %v1844_v44 = vmul.f32 %v3613_v3, %v3821_v48  ;;  %v3853_v41 = vadd.s32 %v2280_v39, %v3388_v11 }
 0x244   : > { %4176 = vst [vmem:[#allocation18_spill] sm:$0xff] %v3818_v32  ;;  %v1842_v34 = vmul.f32 %v3613_v3, %v3818_v32 }
 0x245   : > { %4181 = vst [vmem:[#allocation22_spill] sm:$0xff] %v3853_v41 }
 0x246   : > { %1903 = vadd.xlane.f32.xlu0 %v1842_v34  ;;  %v2285_v34 = vsub.s32 0, %v2280_v39 }
 0x247   : > { %1905 = vadd.xlane.f32.xlu1 %v1843_v16  ;;  %v2289_v16 = vsub.s32 1, %v2280_v39 }
 0x24a   : > { %1907 = vadd.xlane.f32.xlu0 %v1844_v44 }
 0x24b   : > { %1873 = vadd.xlane.f32.xlu1 %v1827_v58 }
 0x24e   : > { %1875 = vadd.xlane.f32.xlu0 %v1828_v25 }
 0x25e   : > { %v1850_v30 = vpop.xlane.xlu1 %1849 }
 0x25f   : > { %v1846_v18 = vpop.xlane.xlu0 %1845  ;;  %v1913_v37 = vadd.f32 %v3839_v4, %v1850_v30  ;;  %v3857_v30 = vrot.slane %v2282_v50, %v2285_v34 }
 0x260   : > { %v1911_v27 = vadd.f32 %v3839_v4, %v1846_v18 }
 0x261   : > { %v1945_v26 = vmax.f32 %v1913_v37, -60.0  ;;  %4182 = vst [vmem:[#allocation23_spill] sm:$0xff] %v3857_v30  ;;  %v2290_v37 = vrot.slane %v2282_v50, %v2289_v16  ;;  %vm2291_vm5 = vcmp.eq.s32.totalorder %v3857_v30, %v3853_v41 }
 0x262   : > { %v1943_v45 = vmax.f32 %v1911_v27, -60.0  ;;  %vm2595_vm12 = vmpackc.low %vm2291_vm5, %vm2291_vm5 }
 0x263   : > { %v1852_v56 = vpop.xlane.xlu0 %1851  ;;  %v1977_v3 = vsub.f32 0.0, %v1945_v26  ;;  %vm2292_vm8 = vcmp.eq.s32.totalorder %v2290_v37, %v3853_v41 }
 0x264   : > { %v1914_v62 = vadd.f32 %v3839_v4, %v1852_v56  ;;  %v1975_v5 = vsub.f32 0.0, %v1943_v45  ;;  %vm2593_vm11 = vmpackc.low %vm2292_vm8, %vm2292_vm8 }
 0x265   : > { %v2011_v8 = vmul.f32 1.442695, %v1977_v3 }
 0x266   : > { %v1946_v51 = vmax.f32 %v1914_v62, -60.0  ;;  %v2007_v23 = vmul.f32 1.442695, %v1975_v5 }
 0x267   : > { %v1848_v52 = vpop.xlane.xlu0 %1847  ;;  %2956 = vpow2.f32 %v2011_v8 }
 0x268   : > { %v1912_v54 = vadd.f32 %v3839_v4, %v1848_v52  ;;  %v1978_v46 = vsub.f32 0.0, %v1946_v51  ;;  %2958 = vpow2.f32 %v2007_v23 }
 0x26a   : > { %v1944_v9 = vmax.f32 %v1912_v54, -60.0  ;;  %v2013_v18 = vmul.f32 1.442695, %v1978_v46  ;;  %v4155_v54 = vmov 1.0|1.0  }
 0x26b   : > { %2594 = vmatprep.mubr.msk.bf16.mxu1 %vm2593_vm11, %v4155_v54 }
 0x26c   : > { %v1976_v10 = vsub.f32 0.0, %v1944_v9 }
 0x26e   : > { %v1858_v43 = vpop.xlane.xlu1 %1857  ;;  %v2009_v44 = vmul.f32 1.442695, %v1976_v10 }
 0x26f   : > { %v1917_v36 = vadd.f32 %v3839_v4, %v1858_v43 }
 0x270   : > { %v1860_v49 = vpop.xlane.xlu0 %1859  ;;  %2960 = vpow2.f32 %v2009_v44 }
 0x271   : > { %v1918_v58 = vadd.f32 %v3839_v4, %v1860_v49  ;;  %v1949_v52 = vmax.f32 %v1917_v36, -60.0  ;;  %2962 = vpow2.f32 %v2013_v18  ;;  %v2957_v5 = vpop.eup %2956 }
 0x272   : > { %v1854_v22 = vpop.xlane.xlu1 %1853  ;;  %v2959_v10 = vpop.eup %2958  ;;  %v2073_v34 = vadd.f32 1.0, %v2957_v5 }
 0x273   : > { %v1915_v56 = vadd.f32 %v3839_v4, %v1854_v22  ;;  %v1950_v11 = vmax.f32 %v1918_v58, -60.0  ;;  %v1981_v3 = vsub.f32 0.0, %v1949_v52 }
 0x274   : > { %v1856_v25 = vpop.xlane.xlu0 %1855 }
 0x275   : > { %v1916_v27 = vadd.f32 %v3839_v4, %v1856_v25  ;;  %v1947_v26 = vmax.f32 %v1915_v56, -60.0  ;;  %v1982_v43 = vsub.f32 0.0, %v1950_v11  ;;  %v2019_v49 = vmul.f32 1.442695, %v1981_v3 }
 0x276   : > { %v2071_v56 = vadd.f32 1.0, %v2959_v10 }
 0x277   : > { %v1948_v9 = vmax.f32 %v1916_v27, -60.0  ;;  %v1979_v51 = vsub.f32 0.0, %v1947_v26  ;;  %v2021_v38 = vmul.f32 1.442695, %v1982_v43  ;;  %2964 = vpow2.f32 %v2019_v49 }
 0x279   : > { %v1980_v8 = vsub.f32 0.0, %v1948_v9  ;;  %v2015_v23 = vmul.f32 1.442695, %v1979_v51  ;;  %2966 = vpow2.f32 %v2021_v38 }
 0x27a   : > { %v2961_v22 = vpop.eup %2960 }
 0x27b   : > { %v2963_v50 = vpop.eup %2962  ;;  %v2017_v36 = vmul.f32 1.442695, %v1980_v8  ;;  %v2072_v58 = vadd.f32 1.0, %v2961_v22  ;;  %2968 = vpow2.f32 %v2015_v23 }
 0x27c   : > { %v2074_v37 = vadd.f32 1.0, %v2963_v50 }
 0x27d   : > { %2970 = vpow2.f32 %v2017_v36 }
 0x27e   : > { %2972 = vrcp.f32 %v2073_v34 }
 0x27f   : > { %v1866_v62 = vpop.xlane.xlu1 %1865  ;;  %2974 = vrcp.f32 %v2072_v58 }
 0x280   : > { %v1921_v52 = vadd.f32 %v3839_v4, %v1866_v62  ;;  %2976 = vrcp.f32 %v2071_v56 }
 0x281   : > { %2978 = vrcp.f32 %v2074_v37  ;;  %v2965_v62 = vpop.eup %2964 }
 0x282   : > { %v1953_v49 = vmax.f32 %v1921_v52, -60.0 }
 0x283   : > { %v1868_v45 = vpop.xlane.xlu0 %1867  ;;  %v1862_v39 = vpop.xlane.xlu1 %1861 }
 0x284   : > { %v2967_v22 = vpop.eup %2966 }
 0x287   : > { %v3864_v46 = vpop.xlane.xlu0 %1863 }
 0x29e   : > { %v1882_v16 = vpop.xlane.xlu1 %1881  ;;  %v1878_v44 = vpop.xlane.xlu0 %1877 }
 0x29f   : > { %v1929_v25 = vadd.f32 %v3839_v4, %v1882_v16  ;;  %v1927_v18 = vadd.f32 %v3839_v4, %v1878_v44  ;;  %v2969_v16 = vpop.eup %2968  ;;  %v1985_v44 = vsub.f32 0.0, %v1953_v49 }
 0x2a1   : > { %v1961_v27 = vmax.f32 %v1929_v25, -60.0  ;;  %v1959_v11 = vmax.f32 %v1927_v18, -60.0  ;;  %v3871_v25 = vadd.f32 1.0, %v2965_v62 }
 0x2a2   : > { %v1884_v26 = vpop.xlane.xlu0 %1883 }
 0x2a3   : > { %v1993_v3 = vsub.f32 0.0, %v1961_v27  ;;  %v1991_v9 = vsub.f32 0.0, %v1959_v11  ;;  %v1880_v43 = vpop.xlane.xlu1 %1879  ;;  %v1930_v51 = vadd.f32 %v3839_v4, %v1884_v26  ;;  %v2971_v11 = vpop.eup %2970  ;;  %v3873_v26 = vadd.f32 1.0, %v2967_v22 }
 0x2a4   : > { %v1928_v5 = vadd.f32 %v3839_v4, %v1880_v43  ;;  %v3875_v52 = vpop.eup %2972  ;;  %v3881_v49 = vadd.f32 1.0, %v2971_v11 }
 0x2a5   : > { %v2043_v8 = vmul.f32 1.442695, %v1993_v3  ;;  %v2039_v10 = vmul.f32 1.442695, %v1991_v9  ;;  %v1962_v23 = vmax.f32 %v1930_v51, -60.0  ;;  %v3877_v3 = vadd.f32 1.0, %v2969_v16  ;;  %v2975_v43 = vpop.eup %2974 }
 0x2a6   : > { %v1960_v38 = vmax.f32 %v1928_v5, -60.0  ;;  %v1922_v9 = vadd.f32 %v3839_v4, %v1868_v45  ;;  %v2027_v51 = vmul.f32 1.442695, %v1985_v44  ;;  %v2977_v5 = vpop.eup %2976  ;;  %v3887_v62 = vmul.f32 %v3875_v52, %v2073_v34 }
 0x2a7   : > { %2980 = vpow2.f32 %v2043_v8  ;;  %v1994_v36 = vsub.f32 0.0, %v1962_v23  ;;  %v2136_v45 = vmul.f32 %v2975_v43, %v2072_v58  ;;  %v1920_v16 = vadd.f32 %v3839_v4, %v3864_v46 }
 0x2a8   : > { %2982 = vpow2.f32 %v2039_v10  ;;  %v1992_v50 = vsub.f32 0.0, %v1960_v38  ;;  %v2979_v10 = vpop.eup %2978  ;;  %v1919_v38 = vadd.f32 %v3839_v4, %v1862_v39  ;;  %v1954_v22 = vmax.f32 %v1922_v9, -60.0 }
 0x2a9   : > { %v2045_v27 = vmul.f32 1.442695, %v1994_v36  ;;  %v2135_v36 = vmul.f32 %v2977_v5, %v2071_v56  ;;  %v2138_v11 = vmul.f32 %v2979_v10, %v2074_v37  ;;  %v2168_v56 = vsub.f32 2.0, %v2136_v45 }
 0x2aa   : > { %v2041_v18 = vmul.f32 1.442695, %v1992_v50  ;;  %v1951_v58 = vmax.f32 %v1919_v38, -60.0  ;;  %v1952_v46 = vmax.f32 %v1920_v16, -60.0 }
 0x2ab   : > { %v2167_v48 = vsub.f32 2.0, %v2135_v36 }
 0x2ac   : > { %2984 = vpow2.f32 %v2041_v18  ;;  %v1984_v32 = vsub.f32 0.0, %v1952_v46 }
 0x2ad   : > { %2986 = vpow2.f32 %v2045_v27 }
 0x2ae   : > { %2988 = vrcp.f32 %v3871_v25  ;;  %v1890_v8 = vpop.xlane.xlu1 %1889 }
 0x2af   : > { %2990 = vrcp.f32 %v3873_v26  ;;  %v1933_v23 = vadd.f32 %v3839_v4, %v1890_v8 }
 0x2b0   : > { %2992 = vrcp.f32 %v3877_v3 }
 0x2b1   : > { %v2981_v50 = vpop.eup %2980  ;;  %2994 = vpow2.f32 %v2027_v51  ;;  %v1965_v44 = vmax.f32 %v1933_v23, -60.0  ;;  %v1892_v18 = vpop.xlane.xlu0 %1891  ;;  %v1986_v51 = vsub.f32 0.0, %v1954_v22 }
 0x2b2   : > { %v2983_v27 = vpop.eup %2982  ;;  %2996 = vrcp.f32 %v3881_v49  ;;  %v2089_v39 = vadd.f32 1.0, %v2981_v50  ;;  %v1934_v34 = vadd.f32 %v3839_v4, %v1892_v18  ;;  %v1886_v8 = vpop.xlane.xlu1 %1885  ;;  %v2170_v50 = vsub.f32 2.0, %v2138_v11 }
 0x2b3   : > { %v2087_v54 = vadd.f32 1.0, %v2983_v27  ;;  %v1997_v41 = vsub.f32 0.0, %v1965_v44  ;;  %v1931_v9 = vadd.f32 %v3839_v4, %v1886_v8  ;;  %v1983_v27 = vsub.f32 0.0, %v1951_v58 }
 0x2b4   : > { %2998 = vrcp.f32 %v2089_v39  ;;  %v1966_v30 = vmax.f32 %v1934_v34, -60.0  ;;  %v2029_v22 = vmul.f32 1.442695, %v1986_v51  ;;  %v2169_v11 = vsub.f32 2.0, %v3887_v62 }
 0x2b5   : > { %3000 = vrcp.f32 %v2087_v54  ;;  %v2051_v23 = vmul.f32 1.442695, %v1997_v41  ;;  %v1963_v0 = vmax.f32 %v1931_v9, -60.0  ;;  %v1888_v37 = vpop.xlane.xlu0 %1887  ;;  %v2200_v9 = vmul.f32 %v2975_v43, %v2168_v56 }
 0x2b6   : > { %v2985_v7 = vpop.eup %2984  ;;  %v1998_v19 = vsub.f32 0.0, %v1966_v30  ;;  %v1932_v18 = vadd.f32 %v3839_v4, %v1888_v37  ;;  %v2199_v58 = vmul.f32 %v2977_v5, %v2167_v48  ;;  %v2202_v51 = vmul.f32 %v2979_v10, %v2170_v50 }
 0x2b7   : > { %v2987_v38 = vpop.eup %2986  ;;  %v2088_v44 = vadd.f32 1.0, %v2985_v7  ;;  %3002 = vpow2.f32 %v2051_v23  ;;  %v1995_v8 = vsub.f32 0.0, %v1963_v0  ;;  %v2025_v56 = vmul.f32 1.442695, %v1984_v32 }
 0x2b8   : > { %v3896_v45 = vpop.eup %2988  ;;  %v2090_v34 = vadd.f32 1.0, %v2987_v38  ;;  %v2053_v16 = vmul.f32 1.442695, %v1998_v19  ;;  %v1964_v17 = vmax.f32 %v1932_v18, -60.0  ;;  %v2023_v19 = vmul.f32 1.442695, %v1983_v27 }
 0x2b9   : > { %v3898_v41 = vpop.eup %2990  ;;  %3004 = vrcp.f32 %v2088_v44  ;;  %v2047_v36 = vmul.f32 1.442695, %v1995_v8  ;;  %v3907_v43 = vmul.f32 %v3896_v45, %v3871_v25  ;;  %v3910_v46 = vmul.f32 %v2200_v9, %v3625_v35 }
 0x2ba   : > { %v3900_v30 = vpop.eup %2992  ;;  %3006 = vrcp.f32 %v2090_v34  ;;  %v1996_v7 = vsub.f32 0.0, %v1964_v17  ;;  %v3913_v17 = vmul.f32 %v3875_v52, %v2169_v11  ;;  %v3917_v5 = vmul.f32 %v3898_v41, %v3873_v26 }
 0x2bb   : > { %v2995_v0 = vpop.eup %2994  ;;  %3008 = vpow2.f32 %v2053_v16  ;;  %v3920_v10 = vmul.f32 %v2199_v58, %v3608_v1  ;;  %v3924_v25 = vmul.f32 %v3900_v30, %v3877_v3  ;;  %v3934_v1 = vmul.f32 %v2202_v51, %v3618_v33 }
 0x2bc   : > { %v3903_v23 = vpop.eup %2996  ;;  %3010 = vpow2.f32 %v2047_v36  ;;  %v2049_v37 = vmul.f32 1.442695, %v1996_v7  ;;  %v3930_v32 = vadd.f32 1.0, %v2995_v0 }
 0x2bd   : > { %3012 = vpow2.f32 %v2029_v22  ;;  %v3928_v35 = vmul.f32 %v3903_v23, %v3881_v49  ;;  %v2171_v36 = vsub.f32 2.0, %v3924_v25 }
 0x2be   : > { %v2999_v48 = vpop.eup %2998  ;;  %3014 = vpow2.f32 %v2049_v37 }
 0x2bf   : > { %v3001_v62 = vpop.eup %3000  ;;  %v2153_v52 = vmul.f32 %v2999_v48, %v2089_v39  ;;  %v1898_v50 = vpop.xlane.xlu1 %1897  ;;  %3016 = vpow2.f32 %v2023_v19 }
 0x2c0   : > { %v2151_v26 = vmul.f32 %v3001_v62, %v2087_v54  ;;  %v1937_v18 = vadd.f32 %v3839_v4, %v1898_v50  ;;  %3018 = vpow2.f32 %v2025_v56 }
 0x2c1   : > { %v3003_v38 = vpop.eup %3002  ;;  %v2185_v3 = vsub.f32 2.0, %v2153_v52  ;;  %3020 = vrcp.f32 %v3930_v32 }
 0x2c2   : > { %v2183_v22 = vsub.f32 2.0, %v2151_v26  ;;  %v3940_v39 = vadd.f32 1.0, %v3003_v38  ;;  %v1969_v16 = vmax.f32 %v1937_v18, -60.0  ;;  %v1900_v54 = vpop.xlane.xlu0 %1899 }
 0x2c3   : > { %v3005_v9 = vpop.eup %3004  ;;  %v1938_v11 = vadd.f32 %v3839_v4, %v1900_v54  ;;  %v1894_v58 = vpop.xlane.xlu1 %1893  ;;  %v2217_v26 = vmul.f32 %v2999_v48, %v2185_v3 }
 0x2c4   : > { %v3007_v7 = vpop.eup %3006  ;;  %v2152_v0 = vmul.f32 %v3005_v9, %v2088_v44  ;;  %3022 = vrcp.f32 %v3940_v39  ;;  %v2001_v51 = vsub.f32 0.0, %v1969_v16  ;;  %v1935_v19 = vadd.f32 %v3839_v4, %v1894_v58 }
 0x2c5   : > { %v3009_v37 = vpop.eup %3008  ;;  %v2154_v56 = vmul.f32 %v3007_v7, %v2090_v34  ;;  %v1970_v52 = vmax.f32 %v1938_v11, -60.0  ;;  %v2215_v50 = vmul.f32 %v3001_v62, %v2183_v22 }
 0x2c6   : > { %v3011_v25 = vpop.eup %3010  ;;  %v2184_v18 = vsub.f32 2.0, %v2152_v0  ;;  %v3948_v38 = vadd.f32 1.0, %v3009_v37  ;;  %v2059_v8 = vmul.f32 1.442695, %v2001_v51  ;;  %v1967_v27 = vmax.f32 %v1935_v19, -60.0  ;;  %v1896_v54 = vpop.xlane.xlu0 %1895 }
 0x2c7   : > { %v3013_v49 = vpop.eup %3012  ;;  %v2186_v33 = vsub.f32 2.0, %v2154_v56  ;;  %v3950_v44 = vadd.f32 1.0, %v3011_v25  ;;  %v2002_v15 = vsub.f32 0.0, %v1970_v52  ;;  %v1936_v16 = vadd.f32 %v3839_v4, %v1896_v54  ;;  %v1870_v58 = vpop.xlane.xlu1 %1869 }
 0x2c8   : > { %v3015_v47 = vpop.eup %3014  ;;  %3024 = vrcp.f32 %v3948_v38  ;;  %v1999_v34 = vsub.f32 0.0, %v1967_v27  ;;  %v1923_v48 = vadd.f32 %v3839_v4, %v1870_v58  ;;  %v2216_v62 = vmul.f32 %v3005_v9, %v2184_v18 }
 0x2c9   : > { %3026 = vrcp.f32 %v3950_v44  ;;  %v3956_v3 = vadd.f32 1.0, %v3015_v47  ;;  %v2061_v22 = vmul.f32 1.442695, %v2002_v15  ;;  %v1968_v11 = vmax.f32 %v1936_v16, -60.0  ;;  %v3017_v0 = vpop.eup %3016 }
 0x2ca   : > { %3028 = vpow2.f32 %v2059_v8  ;;  %v2055_v51 = vmul.f32 1.442695, %v1999_v34  ;;  %v1955_v19 = vmax.f32 %v1923_v48, -60.0  ;;  %v1872_v37 = vpop.xlane.xlu0 %1871  ;;  %v2247_v56 = vmul.f32 %v2215_v50, %v3722_v55  ;;  %v3019_v52 = vpop.eup %3018 }
 0x2cb   : > { %3030 = vrcp.f32 %v3956_v3  ;;  %v2000_v27 = vsub.f32 0.0, %v1968_v11  ;;  %v1924_v25 = vadd.f32 %v3839_v4, %v1872_v37  ;;  %v2248_v9 = vmul.f32 %v2216_v62, %v3733_v60  ;;  %v3964_v54 = vpop.eup %3020 }
 0x2cc   : > { %v3962_v18 = vadd.f32 1.0, %v3013_v49  ;;  %3032 = vpow2.f32 %v2061_v22  ;;  %v1987_v47 = vsub.f32 0.0, %v1955_v19  ;;  %v2218_v15 = vmul.f32 %v3007_v7, %v2186_v33 }
 0x2cd   : > { %3034 = vpow2.f32 %v2055_v51  ;;  %v2057_v8 = vmul.f32 1.442695, %v2000_v27  ;;  %v1956_v16 = vmax.f32 %v1924_v25, -60.0  ;;  %v2271_v58 = vpack.c.bf16 %v2248_v9, %v2247_v56 }
 0x2ce   : > { %v3966_v55 = vpop.eup %3022  ;;  %v3968_v50 = vadd.f32 1.0, %v3019_v52  ;;  %v2031_v34 = vmul.f32 1.442695, %v1987_v47  ;;  %v2249_v48 = vmul.f32 %v2217_v26, %v3719_v28  ;;  %v2250_v60 = vmul.f32 %v2218_v15, %v3726_v42 }
 0x2cf   : > { %v2203_v49 = vmul.f32 %v3900_v30, %v2171_v36  ;;  %3036 = vpow2.f32 %v2057_v8  ;;  %v1988_v62 = vsub.f32 0.0, %v1956_v16  ;;  %2636 = vmatprep.subr.bf16.mxu1 %v2271_v58  ;;  %v2233_v33 = vmul.f32 %v3913_v17, %v3605_v61 }
 0x2d0   : > { %v4183_v7 = vsub.f32 2.0, %v3928_v35  ;;  %v3978_v11 = vadd.f32 1.0, %v3017_v0  ;;  %3038 = vpow2.f32 %v2031_v34  ;;  %v4184_v28 = vpack.c.bf16 %v3910_v46, %v3920_v10  ;;  %v1902_v42 = vpop.xlane.xlu1 %1901 }
 0x2d1   : > { %v2272_v26 = vpack.c.bf16 %v2250_v60, %v2249_v48  ;;  %3040 = vrcp.f32 %v3962_v18  ;;  %v2157_v30 = vmul.f32 %v3966_v55, %v3940_v39  ;;  %v2033_v36 = vmul.f32 1.442695, %v1988_v62 }
 0x2d2   : > { %v2204_v22 = vmul.f32 %v3903_v23, %v4183_v7  ;;  %2637 = vmatpush3.bf16.msra.mxu1 %v4184_v28  ;;  %v1939_v61 = vadd.f32 %v3839_v4, %v1902_v42  ;;  %v3987_v17 = vpop.eup %3024  ;;  %v4185_v23 = vsub.f32 2.0, %v3907_v43  ;;  %v4186_v46 = vsub.f32 2.0, %v3917_v5 }
 0x2d3   : > { %3042 = vrcp.f32 %v3968_v50  ;;  %2638 = vmatprep.subr.bf16.mxu1 %v2272_v26  ;;  %v2264_v39 = vpack.c.bf16 %v3934_v1, %v2233_v33  ;;  %v3027_v0 = vpop.eup %3026  ;;  %v2158_v51 = vmul.f32 %v3987_v17, %v3948_v38  ;;  %v1904_v43 = vpop.xlane.xlu0 %1903  ;;  %v2189_v38 = vsub.f32 2.0, %v2157_v30 }
 0x2d4   : > { %v3992_v35 = vmul.f32 %v3896_v45, %v4185_v23  ;;  %v3997_v10 = vmul.f32 %v3898_v41, %v4186_v46  ;;  %3044 = vpow2.f32 %v2033_v36  ;;  %v1971_v19 = vmax.f32 %v1939_v61, -60.0  ;;  %v3029_v37 = vpop.eup %3028  ;;  %v1906_v56 = vpop.xlane.xlu1 %1905 }
 0x2d5   : > { %v4004_v45 = vmul.f32 %v2203_v49, %v3643_v63  ;;  %3046 = vrcp.f32 %v3978_v11  ;;  %v2155_v41 = vmul.f32 %v3027_v0, %v3950_v44  ;;  %v1940_v5 = vadd.f32 %v3839_v4, %v1904_v43  ;;  %v3031_v52 = vpop.eup %3030 }
 0x2d6   : > { %2639 = vmatpush3.bf16.msra.mxu1 %v2264_v39  ;;  %v4010_v1 = vmul.f32 %v2204_v22, %v3651_v53  ;;  %v4012_v27 = vadd.f32 1.0, %v3029_v37  ;;  %v2003_v25 = vsub.f32 0.0, %v1971_v19  ;;  %v1941_v63 = vadd.f32 %v3839_v4, %v1906_v56  ;;  %v3033_v9 = vpop.eup %3032 }
 0x2d7   : > { %v2190_v47 = vsub.f32 2.0, %v2158_v51  ;;  %v2187_v15 = vsub.f32 2.0, %v2155_v41  ;;  %v2156_v8 = vmul.f32 %v3031_v52, %v3956_v3  ;;  %v1972_v44 = vmax.f32 %v1940_v5, -60.0  ;;  %v3035_v16 = vpop.eup %3034  ;;  %v1908_v48 = vpop.xlane.xlu0 %1907 }
 0x2d8   : > { %3048 = vrcp.f32 %v4012_v27  ;;  %v4017_v58 = vadd.f32 1.0, %v3033_v9  ;;  %v2063_v53 = vmul.f32 1.442695, %v2003_v25  ;;  %v1973_v34 = vmax.f32 %v1941_v63, -60.0  ;;  %v1874_v7 = vpop.xlane.xlu1 %1873 }
 0x2d9   : > { %v2188_v60 = vsub.f32 2.0, %v2156_v8  ;;  %v4019_v49 = vadd.f32 1.0, %v3035_v16  ;;  %v2004_v62 = vsub.f32 0.0, %v1972_v44  ;;  %v1942_v33 = vadd.f32 %v3839_v4, %v1908_v48  ;;  %v3037_v22 = vpop.eup %3036 }
 0x2da   : > { %3050 = vrcp.f32 %v4017_v58  ;;  %v2005_v3 = vsub.f32 0.0, %v1973_v34  ;;  %v1925_v28 = vadd.f32 %v3839_v4, %v1874_v7  ;;  %v2219_v42 = vmul.f32 %v3027_v0, %v2187_v15  ;;  %v3039_v26 = vpop.eup %3038 }
 0x2db   : > { %3052 = vrcp.f32 %v4019_v49  ;;  %v4025_v30 = vadd.f32 1.0, %v3037_v22  ;;  %v2065_v36 = vmul.f32 1.442695, %v2004_v62  ;;  %v1974_v61 = vmax.f32 %v1942_v33, -60.0  ;;  %v4027_v23 = vpop.eup %3040  ;;  %v1876_v51 = vpop.xlane.xlu0 %1875 }
 0x2dc   : > { %3054 = vpow2.f32 %v2063_v53  ;;  %v2067_v46 = vmul.f32 1.442695, %v2005_v3  ;;  %v1957_v39 = vmax.f32 %v1925_v28, -60.0  ;;  %v2221_v19 = vmul.f32 %v3966_v55, %v2189_v38 }
 0x2dd   : > { %v3043_v43 = vpop.eup %3042  ;;  %3056 = vrcp.f32 %v4025_v30  ;;  %v2006_v37 = vsub.f32 0.0, %v1974_v61  ;;  %v1926_v0 = vadd.f32 %v3839_v4, %v1876_v51  ;;  %v2220_v41 = vmul.f32 %v3031_v52, %v2188_v60 }
 0x2de   : > { %v3045_v5 = vpop.eup %3044  ;;  %v4032_v56 = vadd.f32 1.0, %v3039_v26  ;;  %v1989_v25 = vsub.f32 0.0, %v1957_v39  ;;  %v2251_v63 = vmul.f32 %v2219_v42, %v3761_v31  ;;  %v2222_v9 = vmul.f32 %v3987_v17, %v2190_v47 }
 0x2df   : > { %v3047_v15 = vpop.eup %3046  ;;  %v4036_v8 = vadd.f32 1.0, %v3045_v5  ;;  %3058 = vpow2.f32 %v2065_v36  ;;  %v2069_v55 = vmul.f32 1.442695, %v2006_v37  ;;  %v1958_v38 = vmax.f32 %v1926_v0, -60.0 }
 0x2e0   : > { %3060 = vpow2.f32 %v2067_v46  ;;  %v2035_v44 = vmul.f32 1.442695, %v1989_v25  ;;  %v2252_v16 = vmul.f32 %v2220_v41, %v3771_v24  ;;  %v2254_v4 = vmul.f32 %v2222_v9, %v3766_v29 }
 0x2e1   : > { %v2144_v52 = vmul.f32 %v3043_v43, %v3968_v50  ;;  %3062 = vrcp.f32 %v4036_v8  ;;  %v1990_v53 = vsub.f32 0.0, %v1958_v38  ;;  %v2238_v31 = vmul.f32 %v3997_v10, %v3646_v2 }
 0x2e2   : > { %v3049_v17 = vpop.eup %3048  ;;  %3064 = vpow2.f32 %v2069_v55  ;;  %v2273_v47 = vpack.c.bf16 %v2252_v16, %v2251_v63  ;;  %v2265_v34 = vpack.c.bf16 %v4010_v1, %v4004_v45  ;;  %v2253_v48 = vmul.f32 %v2221_v19, %v3758_v40 }
 0x2e3   : > { %v2143_v24 = vmul.f32 %v3047_v15, %v3978_v11  ;;  %v2161_v29 = vmul.f32 %v3049_v17, %v4012_v27  ;;  %3066 = vpow2.f32 %v2035_v44  ;;  %v2037_v50 = vmul.f32 1.442695, %v1990_v53 }
 0x2e4   : > { %v3051_v60 = vpop.eup %3050  ;;  %3068 = vrcp.f32 %v4032_v56  ;;  %2640 = vmatprep.subr.bf16.mxu1 %v2273_v47  ;;  %v2274_v62 = vpack.c.bf16 %v2254_v4, %v2253_v48  ;;  %v2237_v2 = vmul.f32 %v3992_v35, %v3640_v57  ;;  %v2146_v45 = vmul.f32 %v4027_v23, %v3962_v18 }
 0x2e5   : > { %v3053_v10 = vpop.eup %3052  ;;  %v2176_v1 = vsub.f32 2.0, %v2144_v52  ;;  %v2162_v40 = vmul.f32 %v3051_v60, %v4017_v58  ;;  %3070 = vpow2.f32 %v2037_v50  ;;  %2641 = vmatpush3.bf16.msra.mxu1 %v2265_v34  ;;  %v2145_v27 = vmul.f32 %v3964_v54, %v3930_v32 }
 0x2e6   : > { %v3055_v11 = vpop.eup %3054  ;;  %v2159_v33 = vmul.f32 %v3053_v10, %v4019_v49  ;;  %2642 = vmatprep.subr.bf16.mxu1 %v2274_v62  ;;  %v2266_v7 = vpack.c.bf16 %v2238_v31, %v2237_v2  ;;  %v2175_v3 = vsub.f32 2.0, %v2143_v24  ;;  %v2193_v57 = vsub.f32 2.0, %v2161_v29 }
 0x2e7   : > { %v3057_v22 = vpop.eup %3056  ;;  %v2194_v35 = vsub.f32 2.0, %v2162_v40  ;;  %v2099_v28 = vadd.f32 1.0, %v3055_v11  ;;  %v2178_v58 = vsub.f32 2.0, %v2146_v45  ;;  %v2208_v36 = vmul.f32 %v3043_v43, %v2176_v1 }
 0x2e8   : > { %v2191_v42 = vsub.f32 2.0, %v2159_v33  ;;  %v2160_v18 = vmul.f32 %v3057_v22, %v4025_v30  ;;  %v2177_v19 = vsub.f32 2.0, %v2145_v27  ;;  %v2207_v37 = vmul.f32 %v3047_v15, %v2175_v3 }
 0x2e9   : > { %v3059_v26 = vpop.eup %3058  ;;  %3072 = vrcp.f32 %v2099_v28  ;;  %2643 = vmatpush3.bf16.msra.mxu1 %v2266_v7  ;;  %v2226_v49 = vmul.f32 %v3051_v60, %v2194_v35  ;;  %v2225_v41 = vmul.f32 %v3049_v17, %v2193_v57  ;;  %v2210_v30 = vmul.f32 %v4027_v23, %v2178_v58  ;;  %v4188_v57 = vld [vmem:[#allocation15_spill] sm:$0xff] }
 0x2ea   : > { %v3061_v61 = vpop.eup %3060  ;;  %v2192_v46 = vsub.f32 2.0, %v2160_v18  ;;  %v2100_v32 = vadd.f32 1.0, %v3059_v26  ;;  %v2223_v39 = vmul.f32 %v3053_v10, %v2191_v42  ;;  %v2240_v9 = vmul.f32 %v2208_v36, %v3683_v59  ;;  %v4189_v26 = vld [vmem:[#allocation16_spill] sm:$0xff]  ;;  %v4190_v36 = vld [vmem:[#allocation18_spill] sm:$0xff] }
 0x2eb   : > { %v3063_v51 = vpop.eup %3062  ;;  %v2101_v0 = vadd.f32 1.0, %v3061_v61  ;;  %v2258_v15 = vmul.f32 %v2226_v49, %v3788_v21  ;;  %v2209_v52 = vmul.f32 %v3964_v54, %v2177_v19  ;;  %v2239_v53 = vmul.f32 %v2207_v37, %v3675_v6  ;;  %v4187_v54 = vld [vmem:[#allocation13_spill] sm:$0xff] }
 0x2ec   : > { %v3065_v5 = vpop.eup %3064  ;;  %3074 = vrcp.f32 %v2100_v32  ;;  %v2224_v25 = vmul.f32 %v3057_v22, %v2192_v46  ;;  %v2255_v44 = vmul.f32 %v2223_v39, %v3783_v12  ;;  %v2257_v23 = vmul.f32 %v2225_v41, %v3780_v14  ;;  %v4191_v46 = vld [vmem:[#allocation14_spill] sm:$0xff] }
 0x2ed   : > { %v3067_v63 = vpop.eup %3066  ;;  %3076 = vrcp.f32 %v2101_v0  ;;  %v2102_v43 = vadd.f32 1.0, %v3065_v5  ;;  %v2148_v31 = vmul.f32 %v3063_v51, %v4036_v8  ;;  %v2267_v47 = vpack.c.bf16 %v2240_v9, %v2239_v53  ;;  %v4193_v5 = vld [vmem:[#allocation19_spill] sm:$0xff] }
 0x2ee   : > { %v3069_v55 = vpop.eup %3068  ;;  %v2085_v38 = vadd.f32 1.0, %v3067_v63  ;;  %v2256_v16 = vmul.f32 %v2224_v25, %v3791_v20  ;;  %v2242_v12 = vmul.f32 %v2210_v30, %v3680_v13  ;;  %v2276_v21 = vpack.c.bf16 %v2258_v15, %v2257_v23  ;;  %v2299_v53 = vld [vmem:[%s3310_s26] sm:$0xff] }
 0x2ef   : > { %v3071_v4 = vpop.eup %3070  ;;  %3078 = vrcp.f32 %v2102_v43  ;;  %v2147_v20 = vmul.f32 %v3069_v55, %v4032_v56  ;;  %v2241_v48 = vmul.f32 %v2209_v52, %v4187_v54  ;;  %v2180_v6 = vsub.f32 2.0, %v2148_v31 }
 0x2f0   : > { %3080 = vrcp.f32 %v2085_v38  ;;  %v2086_v59 = vadd.f32 1.0, %v3071_v4  ;;  %v2275_v17 = vpack.c.bf16 %v2256_v16, %v2255_v44  ;;  %v4198_v4 = vmov 1.0|1.0  }
 0x2f1   : > { %v2268_v14 = vpack.c.bf16 %v2242_v12, %v2241_v48  ;;  %v2179_v29 = vsub.f32 2.0, %v2147_v20  ;;  %v2212_v13 = vmul.f32 %v3063_v51, %v2180_v6 }
 0x2f2   : > { %3082 = vrcp.f32 %v2086_v59  ;;  %2644 = vmatprep.subr.bf16.mxu1 %v2275_v17 }
 0x2f3   : > { %v3073_v34 = vpop.eup %3072  ;;  %2645 = vmatpush3.bf16.msra.mxu1 %v2267_v47  ;;  %v2211_v40 = vmul.f32 %v3069_v55, %v2179_v29  ;;  %v2244_v35 = vmul.f32 %v2212_v13, %v4188_v57  ;;  %v4195_v55 = vld [vmem:[#allocation21_spill] sm:$0xff] }
 0x2f4   : > { %v2163_v24 = vmul.f32 %v3073_v34, %v2099_v28  ;;  %2646 = vmatprep.subr.bf16.mxu1 %v2276_v21 }
 0x2f6   : > { %v3075_v8 = vpop.eup %3074  ;;  %v2195_v50 = vsub.f32 2.0, %v2163_v24 }
 0x2f7   : > { %v3077_v60 = vpop.eup %3076  ;;  %v2164_v62 = vmul.f32 %v3075_v8, %v2100_v32  ;;  %2647 = vmatpush3.bf16.msra.mxu1 %v2268_v14  ;;  %v2243_v32 = vmul.f32 %v2211_v40, %v4191_v46 }
 0x2f8   : > { %v2165_v2 = vmul.f32 %v3077_v60, %v2101_v0  ;;  %v2227_v45 = vmul.f32 %v3073_v34, %v2195_v50  ;;  %v4192_v0 = vld [vmem:[#allocation17_spill] sm:$0xff] }
 0x2f9   : > { %v3079_v56 = vpop.eup %3078  ;;  %v2196_v10 = vsub.f32 2.0, %v2164_v62  ;;  %v2269_v37 = vpack.c.bf16 %v2244_v35, %v2243_v32 }
 0x2fa   : > { %v3081_v1 = vpop.eup %3080  ;;  %v2197_v11 = vsub.f32 2.0, %v2165_v2  ;;  %v2166_v27 = vmul.f32 %v3079_v56, %v2102_v43  ;;  %v2259_v58 = vmul.f32 %v2227_v45, %v4189_v26  ;;  %v4194_v43 = vld [vmem:[#allocation20_spill] sm:$0xff] }
 0x2fb   : > { %v2149_v33 = vmul.f32 %v3081_v1, %v2085_v38  ;;  %v2228_v7 = vmul.f32 %v3075_v8, %v2196_v10 }
 0x2fc   : > { %v3083_v22 = vpop.eup %3082  ;;  %v2198_v3 = vsub.f32 2.0, %v2166_v27  ;;  %v2229_v28 = vmul.f32 %v3077_v60, %v2197_v11 }
 0x2fd   : > { %v2181_v42 = vsub.f32 2.0, %v2149_v33  ;;  %v2150_v18 = vmul.f32 %v3083_v22, %v2086_v59  ;;  %v2260_v61 = vmul.f32 %v2228_v7, %v4190_v36 }
 0x2fe   : > { %v2230_v39 = vmul.f32 %v3079_v56, %v2198_v3  ;;  %v2261_v41 = vmul.f32 %v2229_v28, %v4192_v0 }
 0x2ff   : > { %v2213_v49 = vmul.f32 %v3081_v1, %v2181_v42  ;;  %v2182_v51 = vsub.f32 2.0, %v2150_v18  ;;  %v2277_v19 = vpack.c.bf16 %v2260_v61, %v2259_v58 }
 0x300   : > { %v2262_v25 = vmul.f32 %v2230_v39, %v4193_v5 }
 0x301   : > { %v2214_v63 = vmul.f32 %v3083_v22, %v2182_v51  ;;  %2648 = vmatprep.subr.bf16.mxu1 %v2277_v19  ;;  %v2245_v9 = vmul.f32 %v2213_v49, %v4194_v43 }
 0x302   : > { %2649 = vmatpush3.bf16.msra.mxu1 %v2269_v37  ;;  %v2278_v30 = vpack.c.bf16 %v2262_v25, %v2261_v41 }
 0x303   : > { %v2246_v38 = vmul.f32 %v2214_v63, %v4195_v55 }
 0x304   : > { %2650 = vmatprep.subr.bf16.mxu1 %v2278_v30 }
 0x305   : > { %v2270_v44 = vpack.c.bf16 %v2246_v38, %v2245_v9 }
 0x307   : > { %2651 = vmatpush3.bf16.msra.mxu1 %v2270_v44 }
 0x30a   : > { %2596 = vmatmul.mubr.msk.bf16.vlgmr.msra.gmra.mrb[32].mxu1 %vm2595_vm12, %v4198_v4 }
 0x3dd   : > { %v2652_v52 = vpop.f32.mrb[32].mxu1 }
 0x3de   : > { %v2653_v23 = vpop.f32.mrb[33].mxu1 }
 0x3df   : > { %v2654_v31 = vadd.f32 %v2653_v23, %v2652_v52  ;;  %v2655_v59 = vpop.f32.mrb[34].mxu1 }
 0x3e0   : > { %v2656_v17 = vpop.f32.mrb[35].mxu1 }
 0x3e1   : > { %v2340_v47 = vadd.f32 %v2654_v31, %v2299_v53 }
 0x3e3   : > { %2341 = vst [vmem:[%s3310_s26] sm:$0xff] %v2340_v47 }
 0x3e4   : > { %3109 = shalt.err (!%p3106_p2)
}
 0x3e5   : > { %s3110_s26 = scalar_lea.hbm %s4094_s8, 128  ;;  %s3114_s12 = scalar_lea.hbm %s4148_s9, 256 }
 0x3e6   : > { %p3111_p3 = scmp.ne.s32.totalorder %s4094_s8, %s3110_s26  ;;  %p3115_p6 = scmp.lt.u32.totalorder %s4094_s8, %s4148_s9 }
 0x3e7   : > { %p3116_p7 = scmp.lt.u32.totalorder %s3114_s12, %s3110_s26  ;;  %p3118_p10 = scmp.lt.u32.totalorder %s3110_s26, %s4094_s8 }
 0x3e8   : > { %p3112_p4 = pnand %p3111_p3, %p3258_p9 }
 0x3e9   : > { %p3117_p8 = por %p3116_p7, %p3115_p6 }
 0x3ea   : > { %p3113_p5 = pneg %p3112_p4 }
 0x3eb   : > { %p3119_p12 = por %p3118_p10, %p3117_p8 }
 0x3ed   : > { %p3120_p13 = pnand %p3119_p12, %p3113_p5 }
 0x3ef   : > { %3123 = shalt.err (!%p3120_p13)
}
 0x3f0   : > { %2764 = dma.vmem_to_hbm [thread:$0]  (%p3258_p9), %s4096_s28, 128, %s4094_s8, %s2343_s20  }
 0x3f1 PF: > { %p2770_p0 = scmp.ge.s32.totalorder %s3160_s17, 2  ;;  %s2369_s14 = sand.u32 1, %s3148_s0  }
 0x3f2   : > { %s2370_s21 = scalar_lea.sflag [#allocation6], %s2369_s14 }
 0x3f3   : > { %p2767_p1 = pnand %p2770_p0, %p3263_p11 }
 0x3f5   : > { %3143 = dma.done.wait (!%p2767_p1), %s2370_s21, 128  }
 0x3f6   : > { %3145 = vsyncadd (!%p2767_p1), %s2370_s21, 4294967168  ;;  %s4200_s17 = sld [smem:[#allocation11_spill]]  ;;  %s4201_s13 = sld [smem:[#allocation10_spill]] }
 0x3f7   : > { %s4202_s8 = sld [smem:[#allocation12_spill]]  ;;  %s4203_s0 = smov %s3152_s16 }
 0x3fc   : > { %p26_p2 = scmp.ge.s32.totalorder %s4200_s17, 8   ;;  %s4204_s16 = smov %s4201_s13 }
 0x3fe   :  { %28 = sbr.rel (!%p26_p2) target bundleno = 18 (0x12), region = 103 }
 0x405   :  { %2375 = vsyncpa [#allocation6], 1 }
 0x406   :  { %2377 = vsyncpa [#allocation6 + $0x1], 1 }

</bundles_post_ra>
